<compile_context>
chip_gen: v7x
topology: tpu7x:2x2x1
jax: 0.10.0
libtpu: 0.0.40
codegen_flags: <defaults>
</compile_context>

<pallas_src>
import functools

import numpy as np

import jax
import jax.numpy as jnp
from jax.experimental import pallas as pl
from jax.experimental.pallas import tpu as pltpu


# ----------------------------------------------------------------------------
# Static (trace-time) helpers: all-pairs span grid, keep-indices (e >= s),
# and the 'extend'/'average_all' span-mean selection matrix. Cached so they
# are built once per (B, S), not per forward call.
# ----------------------------------------------------------------------------
@functools.lru_cache(maxsize=None)
def _all_pairs_bounds(B, S):
    rr = np.repeat(np.arange(S, dtype=np.int32), S)
    cc = np.tile(np.arange(S, dtype=np.int32), S)
    mb = np.stack([rr, cc], axis=-1)                     # (S*S, 2)
    return jnp.broadcast_to(jnp.asarray(mb)[None], (B, S * S, 2))


@functools.lru_cache(maxsize=None)
def _keep_indices(S):
    # flat (s, e) indices with e >= s, row-major — identical order to the
    # boolean-mask filtering in the reference module.
    return np.array([s * S + e for s in range(S) for e in range(s, S)],
                    dtype=np.int32)


def _build_span_sel(S, method="extend"):
    """(M, S) row-normalized selection matrix; M = S*(S+1)//2 kept spans."""
    rows = []
    for s in range(S):
        for e in range(s, S):
            if method == "extend":
                st, en = s - 1, e + 1
                if st <= 0:
                    st = 1
                if en >= S - 1:
                    en = S - 2
            elif method == "average_all":
                st, en = s, e
            else:
                raise NotImplementedError(method)
            v = np.zeros(S, np.float32)
            if en >= st:
                v[st:en + 1] = 1.0
            cnt = max(float(v.sum()), 1.0)
            rows.append(v / cnt)
    return np.stack(rows).astype(np.float32)             # (M, S)


@functools.lru_cache(maxsize=None)
def _span_sel_bf16(S, method="extend"):
    return jnp.asarray(_build_span_sel(S, method), dtype=jnp.bfloat16)


def _pick_batch_tile(B, S, target_rows=256):
    """Batch tile Bt (a divisor of B).

    Bt*S ~ 256 rows saturates the v6e/v7x MXU (v5e saturates at 128). Prefer
    the smallest saturating tile that still leaves >=2 grid steps so v7x's
    second TensorCore gets work; otherwise take the largest tile that keeps
    the row block near the MXU target (amortises per-step overhead).
    Blocks of (Bt*S, H) require Bt*S % 8 == 0 unless Bt == B.
    """
    def ok(d):
        return d == B or (d * S) % 8 == 0
    divisors = [d for d in range(1, B + 1) if B % d == 0 and ok(d)]
    for d in divisors:                                   # increasing order
        if d * S >= target_rows and B // d >= 2:
            return d
    fitting = [d for d in divisors if d * S <= 2 * target_rows]
    return max(fitting) if fitting else B


# ----------------------------------------------------------------------------
# Fused context kernel: encoder projection + MentionScoresHead ('qa_linear',
# max_mention_length) + span-mean mention embeddings, one grid step per
# BATCH TILE (Bt elements); bert_output stays live in VMEM between stages.
# ----------------------------------------------------------------------------
def _ctxt_fused_kernel(emb_ref, mcol_ref, mrow_ref, enc_w_ref, enc_b_ref,
                       qa_w_ref, qa_b_ref, sel_ref,
                       bert_ref, scores_ref, memb_ref, *, bt, seq, max_len):
    S = seq
    H = enc_w_ref.shape[1]
    M = sel_ref.shape[0]

    emb = emb_ref[...]                                    # (bt*S, H) bf16

    # ---- 1) encoder projection: bt*S rows fill the MXU M dimension ----
    x = jnp.dot(emb, enc_w_ref[...],
                preferred_element_type=jnp.float32) + enc_b_ref[...]   # (bt*S, H)
    bert_ref[...] = x.astype(bert_ref.dtype)              # bf16 writeback

    # ---- 2) mention-scores head; bound classifier pre-folded into embedding
    #         space so this matmul does not wait on x -------------------------
    logits = jnp.dot(emb, qa_w_ref[...],
                     preferred_element_type=jnp.float32) + qa_b_ref[...]  # (bt*S, 128)
    logits3 = logits.reshape(bt, S, qa_w_ref.shape[1])    # leading-dim unfold
    start = logits3[:, :, 0:1]                            # (bt, S, 1) start logit at s
    end = logits3[:, :, 1:2]                              # (bt, S, 1) end logit at e
    ment = logits3[:, :, 2:3]                             # (bt, S, 1) per-token mention logit

    mcol = mcol_ref[...]                                  # (bt, S, 1) mask over s
    mrow = mrow_ref[...]                                  # (bt, 1, S) mask over e
    ment_z = jnp.where(mcol > 0, ment, 0.0)               # zero masked tokens

    r = jax.lax.broadcasted_iota(jnp.int32, (S, S), 0)    # span start s (sublanes)
    c = jax.lax.broadcasted_iota(jnp.int32, (S, S), 1)    # span end   e (lanes)
    ut = (c >= r).astype(jnp.float32)
    eye = (c == r).astype(jnp.float32)

    # One batched (bt,S,S)x(bt,S,S) dot gives, for every valid span (s <= e):
    #   sum_{s<=k<=e} ment_z[k]  +  end[e]
    rhs = ut[None] * ment_z + eye[None] * end             # (bt, S, S)
    ut3 = jnp.broadcast_to(ut, (bt, S, S))
    span_end = jax.lax.dot_general(
        ut3, rhs, dimension_numbers=(((2,), (1,)), ((0,), (0,))),
        preferred_element_type=jnp.float32)               # (bt, S, S)

    scores = start + span_end                             # score[b, s, e]
    valid = (((c >= r) & ((c - r) < max_len))[None]
             & (mcol > 0) & (mrow > 0))
    scores_ref[...] = jnp.where(valid, scores, -jnp.inf)

    # ---- 3) span-mean mention embeddings ('extend'): batched (M,S)x(S,H) ----
    x3 = x.reshape(bt, S, H).astype(jnp.bfloat16)
    sel3 = jnp.broadcast_to(sel_ref[...], (bt, M, S))
    memb = jax.lax.dot_general(
        sel3, x3, dimension_numbers=(((2,), (1,)), ((0,), (0,))),
        preferred_element_type=jnp.float32)
    memb_ref[...] = memb.astype(memb_ref.dtype)           # bf16 writeback


def fused_ctxt_forward(emb_bf16, input_mask, enc_w_bf16, enc_b,
                       qa_w_bf16, qa_b, sel_bf16, max_mention_length):
    B, S, H = emb_bf16.shape
    M = sel_bf16.shape[0]
    bt = _pick_batch_tile(B, S)
    grid = (B // bt,)

    emb2d = emb_bf16.reshape(B * S, H)                    # free metadata reshape
    mask_f = input_mask.astype(jnp.float32)
    mcol = mask_f.reshape(B, S, 1)
    mrow = mask_f.reshape(B, 1, S)

    kern = functools.partial(_ctxt_fused_kernel, bt=bt, seq=S,
                             max_len=max_mention_length)
    bert2d, scores3, memb = pl.pallas_call(
        kern,
        out_shape=(
            jax.ShapeDtypeStruct((B * S, H), jnp.bfloat16),   # bert_output
            jax.ShapeDtypeStruct((B, S, S), jnp.float32),     # span scores (-inf sentinel)
            jax.ShapeDtypeStruct((B, M, H), jnp.bfloat16),    # mention embeddings
        ),
        grid=grid,
        in_specs=[
            pl.BlockSpec((bt * S, H), lambda i: (i, 0)),       # token embeddings (bf16)
            pl.BlockSpec((bt, S, 1), lambda i: (i, 0, 0)),     # mask, start layout
            pl.BlockSpec((bt, 1, S), lambda i: (i, 0, 0)),     # mask, end layout
            pl.BlockSpec((H, H), lambda i: (0, 0)),            # encoder weight (bf16)
            pl.BlockSpec((1, H), lambda i: (0, 0)),            # encoder bias
            pl.BlockSpec((H, 128), lambda i: (0, 0)),          # fused qa weight (bf16)
            pl.BlockSpec((1, 128), lambda i: (0, 0)),          # fused qa bias
            pl.BlockSpec((M, S), lambda i: (0, 0)),            # static span-mean selector
        ],
        out_specs=(
            pl.BlockSpec((bt * S, H), lambda i: (i, 0)),
            pl.BlockSpec((bt, S, S), lambda i: (i, 0, 0)),
            pl.BlockSpec((bt, M, H), lambda i: (i, 0, 0)),
        ),
        compiler_params=pltpu.CompilerParams(
            dimension_semantics=("parallel",)),
    )(emb2d, mcol, mrow, enc_w_bf16, enc_b, qa_w_bf16, qa_b, sel_bf16)
    return bert2d.reshape(B, S, H), scores3, memb


# ----------------------------------------------------------------------------
# Masked-mean BCE-with-logits (mention loss and EL loss). Tiny reduction.
# ----------------------------------------------------------------------------
def _bce_kernel(x_ref, y_ref, v_ref, out_ref):
    x = x_ref[...]
    y = y_ref[...]
    v = v_ref[...]
    xs = jnp.where(v > 0, x, 0.0)                         # neutralize -inf entries
    per = jnp.maximum(xs, 0.0) - xs * y + jnp.log(1.0 + jnp.exp(-jnp.abs(xs)))
    total = jnp.sum(per * v)
    cnt = jnp.maximum(jnp.sum(v), 1.0)
    out_ref[...] = jnp.full((1, 1), total / cnt, dtype=jnp.float32)


def bce_with_logits_mean(scores, labels, valid):
    x = scores.reshape(1, -1).astype(jnp.float32)
    y = labels.reshape(1, -1).astype(jnp.float32)
    v = valid.reshape(1, -1).astype(jnp.float32)
    out = pl.pallas_call(
        _bce_kernel,
        out_shape=jax.ShapeDtypeStruct((1, 1), jnp.float32),
    )(x, y, v)
    return out[0, 0]


# ----------------------------------------------------------------------------
# score_cand — bmm(cand_embedding, mention_embedding.unsqueeze(2)) computed as
# a VPU broadcast-multiply + f32 lane reduce, gridded over N (bounds VMEM for
# large candidate sets; bf16 operands halve the DMA traffic).
# ----------------------------------------------------------------------------
def _score_cand_kernel(cand_ref, ment_ref, out_ref):
    c = cand_ref[...].astype(jnp.float32)                 # (nt, C, D)
    m = ment_ref[...].astype(jnp.float32)                 # (nt, 1, D)
    out_ref[...] = jnp.sum(c * m, axis=-1)                # (nt, C)


def _pick_n_tile(N, cap=256):
    if N <= cap:
        return N
    for nt in range(min(cap, N), 0, -1):
        if N % nt == 0 and nt % 8 == 0:
            return nt
    return N


def score_cand(mention_embedding, cand_embedding):
    N, C, D = cand_embedding.shape
    nt = _pick_n_tile(N)
    ment = mention_embedding.reshape(N, 1, D)
    # NOTE: ideally callers store candidate embeddings in bf16 to avoid this cast pass.
    scores = pl.pallas_call(
        _score_cand_kernel,
        out_shape=jax.ShapeDtypeStruct((N, C), jnp.float32),
        grid=(N // nt,),
        in_specs=[
            pl.BlockSpec((nt, C, D), lambda i: (i, 0, 0)),
            pl.BlockSpec((nt, 1, D), lambda i: (i, 0, 0)),
        ],
        out_specs=pl.BlockSpec((nt, C), lambda i: (i, 0)),
        compiler_params=pltpu.CompilerParams(dimension_semantics=("parallel",)),
    )(cand_embedding.astype(jnp.bfloat16), ment.astype(jnp.bfloat16))
    return scores.reshape(N, C, 1)                        # keep the bmm output shape


# ----------------------------------------------------------------------------
# Model wrapper mirroring BiencoderRanker.forward
# ----------------------------------------------------------------------------
class BiencoderRankerPallas:
    def __init__(self, key, vocab=32, hidden=768, max_mention_length=10):
        k = jax.random.split(key, 5)
        s = 0.02
        self.hidden = hidden
        self.max_mention_length = max_mention_length
        # deterministic synthetic parameters (shapes per the module's __init__)
        self.emb_table = jax.random.normal(k[0], (vocab, hidden), jnp.float32) * s
        self.enc_w = jax.random.normal(k[1], (hidden, hidden), jnp.float32) * s
        self.enc_b = jnp.zeros((1, hidden), jnp.float32)
        # MentionScoresHead: bound_classifier = Linear(768, 3)  (qa_linear)
        self.bound_w = jax.random.normal(k[2], (hidden, 3), jnp.float32) * s
        self.bound_b = jnp.zeros((3,), jnp.float32)
        # change_mention_embedding_dim = Linear(768, 1024) (declared, unused in forward)
        self.chg_w = jax.random.normal(k[3], (hidden, 1024), jnp.float32) * s
        self.chg_b = jnp.zeros((1024,), jnp.float32)
        self.ment_loss = None

        # --- precomputed kernel-side parameters (built once, not per call) ---
        # NOTE: bf16 MXU operands => ~1e-2 relative error vs the f32 reference.
        self.emb_table_bf16 = self.emb_table.astype(jnp.bfloat16)
        self.enc_w_bf16 = self.enc_w.astype(jnp.bfloat16)
        wpad = jnp.zeros((hidden, 128), jnp.float32).at[:, :3].set(self.bound_w)
        bpad = jnp.zeros((1, 128), jnp.float32).at[:, :3].set(self.bound_b)
        # fold bound classifier into embedding space (see header comment)
        self.qa_w_fused = (self.enc_w @ wpad).astype(jnp.bfloat16)     # (H, 128)
        self.qa_b_fused = self.enc_b @ wpad + bpad                     # (1, 128) f32

    # ---- context side (fused kernel) ----
    def forward_ctxt(self, input_ids, segment_type, input_mask, EL=False):
        B, S = input_ids.shape
        emb = jnp.take(self.emb_table_bf16, input_ids, axis=0)   # (B, S, H) bf16 gather
        sel = _span_sel_bf16(S, "extend")
        bert_output, scores3, memb = fused_ctxt_forward(
            emb, input_mask, self.enc_w_bf16, self.enc_b,
            self.qa_w_fused, self.qa_b_fused, sel, self.max_mention_length)

        mention_scores = scores3.reshape(B, S * S)
        mention_bounds = _all_pairs_bounds(B, S)
        if EL:
            keep = _keep_indices(S)                               # static (e >= s) filter
            mention_scores = mention_scores[:, keep]
            mention_bounds = mention_bounds[:, keep, :]
            mention_embedding = memb
        else:
            mention_embedding = None
        return bert_output, mention_scores, mention_bounds, mention_embedding

    def mention_loss(self, gold_mention_bounds, gold_mention_bounds_mask,
                     mention_scores, mention_bounds):
        # TODO(synk): the exact MentionLoss module is external to the snippet;
        # implemented as ELQ-style BCE-with-logits over valid candidate spans.
        gold = gold_mention_bounds.astype(jnp.int32)
        gold = gold.at[:, :, 1].add(-1)                           # inclusive-end convention
        gmask = gold_mention_bounds_mask.astype(bool)
        gold = jnp.where(gmask[:, :, None], gold, -1)
        mb = mention_bounds.astype(jnp.int32)
        eq = ((mb[:, :, None, 0] == gold[:, None, :, 0]) &
              (mb[:, :, None, 1] == gold[:, None, :, 1]) &
              (gold[:, None, :, 0] >= 0))
        labels = jnp.any(eq, axis=-1).astype(jnp.float32)         # (B, M)
        valid = jnp.isfinite(mention_scores).astype(jnp.float32)
        return bce_with_logits_mean(mention_scores, labels, valid)

    # ---- candidate side ----
    def forward_cand(self, input_ids, segment_type, input_mask):
        # TODO(synk): frozen WikiEncoder cand_encoder is an external checkpoint;
        # only the pre_trained_cand path is supported here.
        raise NotImplementedError("cand_encoder checkpoint not available")

    def score_cand(self, mention_embedding, cand_embedding):
        return score_cand(mention_embedding, cand_embedding)

    # ---- full forward ----
    def forward(self, input_ids_ctxt, input_mask_ctxt, gold_mention_bounds,
                gold_mention_bounds_mask, input_ids_cand=None, segment_type_cand=None,
                input_mask_cand=None, return_forward_ctxt=True, pre_trained_cand=None,
                all_mention_embedding=None, candidate_label=None, EL=False):
        segment_type_ctxt = jnp.ones_like(input_ids_ctxt, dtype=jnp.int8)
        if return_forward_ctxt:
            (bert_output_ctxt, mention_scores, mention_bounds,
             mention_embedding) = self.forward_ctxt(
                input_ids_ctxt, segment_type_ctxt, input_mask_ctxt, EL)
            ment_loss = self.mention_loss(gold_mention_bounds,
                                          gold_mention_bounds_mask,
                                          mention_scores, mention_bounds)
            self.ment_loss = ment_loss
            return (bert_output_ctxt, mention_scores, mention_bounds,
                    mention_embedding, ment_loss)

        if pre_trained_cand is None:
            cand_embedding = self.forward_cand(input_ids_cand, segment_type_cand,
                                               input_mask_cand)
        else:
            cand_embedding = pre_trained_cand
        scores = self.score_cand(all_mention_embedding, cand_embedding)
        scores = scores.reshape(-1, 1)
        labels = candidate_label.reshape(-1, 1)
        el_loss = bce_with_logits_mean(scores, labels, jnp.ones_like(scores))
        return el_loss + self.ment_loss


if __name__ == "__main__":
    B, S, V, H = 2, 8, 32, 768          # small batch/seq; hidden fixed by the module (768)
    key = jax.random.PRNGKey(0)
    model = BiencoderRankerPallas(key, vocab=V, hidden=H, max_mention_length=10)

    k1, k2, k3, k4 = jax.random.split(jax.random.PRNGKey(0), 4)
    input_ids_ctxt = jax.random.randint(k1, (B, S), 0, V)
    input_mask_ctxt = jnp.ones((B, S), jnp.int32).at[1, 6:].set(0)
    gold_mention_bounds = jnp.array([[[2, 4], [-1, -1], [-1, -1]],
                                     [[1, 3], [-1, -1], [-1, -1]]], jnp.int32)
    gold_mention_bounds_mask = jnp.array([[1, 0, 0], [1, 0, 0]], jnp.int32)

    # Path 1: context / mention-detection branch (default forward branch), with EL=True
    bert_out, ment_scores, ment_bounds, ment_emb, ment_loss = model.forward(
        input_ids_ctxt, input_mask_ctxt, gold_mention_bounds,
        gold_mention_bounds_mask, EL=True)

    # Path 2: candidate-scoring branch (return_forward_ctxt=False) with precomputed cands
    N, C = 3, 2
    all_mention_embedding = jax.random.normal(k2, (N, H), jnp.float32)
    pre_trained_cand = jax.random.normal(k3, (N, C, H), jnp.float32)
    candidate_label = jax.random.randint(k4, (N, C), 0, 2)
    total_loss = model.forward(
        input_ids_ctxt, input_mask_ctxt, gold_mention_bounds,
        gold_mention_bounds_mask, return_forward_ctxt=False,
        pre_trained_cand=pre_trained_cand,
        all_mention_embedding=all_mention_embedding,
        candidate_label=candidate_label)

    jax.block_until_ready((bert_out, ment_scores, ment_bounds, ment_emb,
                           ment_loss, total_loss))
    print("KERNEL_OK")
</pallas_src>

<mosaic_0001>
module attributes {stable_mosaic.version = 11 : i64} {
  func.func @_ctxt_fused_kernel(%arg0: i32, %arg1: memref<16x768xbf16, #tpu.memory_space<vmem>>, %arg2: memref<2x8x1xf32, #tpu.memory_space<vmem>>, %arg3: memref<2x1x8xf32, #tpu.memory_space<vmem>>, %arg4: memref<768x768xbf16, #tpu.memory_space<vmem>>, %arg5: memref<1x768xf32, #tpu.memory_space<vmem>>, %arg6: memref<768x128xbf16, #tpu.memory_space<vmem>>, %arg7: memref<1x128xf32, #tpu.memory_space<vmem>>, %arg8: memref<36x8xbf16, #tpu.memory_space<vmem>>, %arg9: memref<16x768xbf16, #tpu.memory_space<vmem>>, %arg10: memref<2x8x8xf32, #tpu.memory_space<vmem>>, %arg11: memref<2x36x768xbf16, #tpu.memory_space<vmem>>) attributes {dimension_semantics = [#tpu.dimension_semantics<parallel>], iteration_bounds = array<i64: 1>, scalar_prefetch = 0 : i64, scratch_operands = 0 : i64, tpu.core_type = #tpu.core_type<tc>, window_params = [{transform_indices = @transform_0, window_bounds = array<i64: 16, 768>}, {transform_indices = @transform_1, window_bounds = array<i64: 2, 8, 1>}, {transform_indices = @transform_2, window_bounds = array<i64: 2, 1, 8>}, {pipeline_mode = #tpu.pipeline_mode<synchronous>, transform_indices = @transform_3, window_bounds = array<i64: 768, 768>}, {pipeline_mode = #tpu.pipeline_mode<synchronous>, transform_indices = @transform_4, window_bounds = array<i64: 1, 768>}, {pipeline_mode = #tpu.pipeline_mode<synchronous>, transform_indices = @transform_5, window_bounds = array<i64: 768, 128>}, {pipeline_mode = #tpu.pipeline_mode<synchronous>, transform_indices = @transform_6, window_bounds = array<i64: 1, 128>}, {pipeline_mode = #tpu.pipeline_mode<synchronous>, transform_indices = @transform_7, window_bounds = array<i64: 36, 8>}, {transform_indices = @transform_8, window_bounds = array<i64: 16, 768>}, {transform_indices = @transform_9, window_bounds = array<i64: 2, 8, 8>}, {transform_indices = @transform_10, window_bounds = array<i64: 2, 36, 768>}]} {
    %c0 = arith.constant 0 : index
    %c0_0 = arith.constant 0 : index
    %0 = vector.load %arg1[%c0, %c0_0] : memref<16x768xbf16, #tpu.memory_space<vmem>>, vector<16x768xbf16>
    %c0_1 = arith.constant 0 : index
    %c0_2 = arith.constant 0 : index
    %1 = vector.load %arg4[%c0_1, %c0_2] : memref<768x768xbf16, #tpu.memory_space<vmem>>, vector<768x768xbf16>
    %cst = arith.constant dense<0.000000e+00> : vector<16x768xf32>
    %2 = tpu.matmul %0, %1, %cst {dimension_numbers = #tpu.dot_dimension_numbers<[1], [0], [0], [1], [0, 0, 1, 1], [], []>} : vector<16x768xbf16>, vector<768x768xbf16>, vector<16x768xf32> -> vector<16x768xf32>
    %c0_3 = arith.constant 0 : index
    %c0_4 = arith.constant 0 : index
    %3 = vector.load %arg5[%c0_3, %c0_4] : memref<1x768xf32, #tpu.memory_space<vmem>>, vector<1x768xf32>
    %4 = vector.broadcast %3 : vector<1x768xf32> to vector<16x768xf32>
    %5 = arith.addf %2, %4 : vector<16x768xf32>
    %6 = arith.truncf %5 : vector<16x768xf32> to vector<16x768xbf16>
    %c0_5 = arith.constant 0 : index
    %c0_6 = arith.constant 0 : index
    %7 = vector.load %arg9[%c0_5, %c0_6] : memref<16x768xbf16, #tpu.memory_space<vmem>>, vector<16x768xbf16>
    tpu.vector_store %arg9[%c0_5, %c0_6], %6 {strides = array<i32>} : memref<16x768xbf16, #tpu.memory_space<vmem>>, vector<16x768xbf16>,
    %c0_7 = arith.constant 0 : index
    %c0_8 = arith.constant 0 : index
    %8 = vector.load %arg6[%c0_7, %c0_8] : memref<768x128xbf16, #tpu.memory_space<vmem>>, vector<768x128xbf16>
    %cst_9 = arith.constant dense<0.000000e+00> : vector<16x128xf32>
    %9 = tpu.matmul %0, %8, %cst_9 {dimension_numbers = #tpu.dot_dimension_numbers<[1], [0], [0], [1], [0, 0, 1, 1], [], []>} : vector<16x768xbf16>, vector<768x128xbf16>, vector<16x128xf32> -> vector<16x128xf32>
    %c0_10 = arith.constant 0 : index
    %c0_11 = arith.constant 0 : index
    %10 = vector.load %arg7[%c0_10, %c0_11] : memref<1x128xf32, #tpu.memory_space<vmem>>, vector<1x128xf32>
    %11 = vector.broadcast %10 : vector<1x128xf32> to vector<16x128xf32>
    %12 = arith.addf %9, %11 : vector<16x128xf32>
    %13 = vector.shape_cast %12 : vector<16x128xf32> to vector<2x8x128xf32>
    %14 = vector.extract_strided_slice %13 {offsets = [0, 0, 0], sizes = [2, 8, 1], strides = [1, 1, 1]} : vector<2x8x128xf32> to vector<2x8x1xf32>
    %15 = vector.extract_strided_slice %13 {offsets = [0, 0, 1], sizes = [2, 8, 1], strides = [1, 1, 1]} : vector<2x8x128xf32> to vector<2x8x1xf32>
    %16 = vector.extract_strided_slice %13 {offsets = [0, 0, 2], sizes = [2, 8, 1], strides = [1, 1, 1]} : vector<2x8x128xf32> to vector<2x8x1xf32>
    %c0_12 = arith.constant 0 : index
    %c0_13 = arith.constant 0 : index
    %c0_14 = arith.constant 0 : index
    %17 = vector.load %arg2[%c0_12, %c0_13, %c0_14] : memref<2x8x1xf32, #tpu.memory_space<vmem>>, vector<2x8x1xf32>
    %c0_15 = arith.constant 0 : index
    %c0_16 = arith.constant 0 : index
    %c0_17 = arith.constant 0 : index
    %18 = vector.load %arg3[%c0_15, %c0_16, %c0_17] : memref<2x1x8xf32, #tpu.memory_space<vmem>>, vector<2x1x8xf32>
    %cst_18 = arith.constant 0.000000e+00 : f32
    %19 = vector.broadcast %cst_18 : f32 to vector<2x8x1xf32>
    %20 = arith.cmpf ogt, %17, %19 : vector<2x8x1xf32>
    %cst_19 = arith.constant 0.000000e+00 : f32
    %21 = vector.broadcast %cst_19 : f32 to vector<2x8x1xf32>
    %22 = arith.select %20, %16, %21 : vector<2x8x1xi1>, vector<2x8x1xf32>
    %23 = tpu.iota {dimensions = array<i32: 0>} : vector<8x8xi32>
    %24 = tpu.iota {dimensions = array<i32: 1>} : vector<8x8xi32>
    %25 = arith.cmpi sge, %24, %23 : vector<8x8xi32>
    %26 = arith.extui %25 : vector<8x8xi1> to vector<8x8xi32>
    %27 = arith.sitofp %26 : vector<8x8xi32> to vector<8x8xf32>
    %28 = arith.cmpi eq, %24, %23 : vector<8x8xi32>
    %29 = arith.extui %28 : vector<8x8xi1> to vector<8x8xi32>
    %30 = arith.sitofp %29 : vector<8x8xi32> to vector<8x8xf32>
    %31 = vector.shape_cast %27 : vector<8x8xf32> to vector<1x8x8xf32>
    %32 = vector.broadcast %31 : vector<1x8x8xf32> to vector<2x8x8xf32>
    %33 = vector.broadcast %22 : vector<2x8x1xf32> to vector<2x8x8xf32>
    %34 = arith.mulf %32, %33 : vector<2x8x8xf32>
    %35 = vector.shape_cast %30 : vector<8x8xf32> to vector<1x8x8xf32>
    %36 = vector.broadcast %35 : vector<1x8x8xf32> to vector<2x8x8xf32>
    %37 = vector.broadcast %15 : vector<2x8x1xf32> to vector<2x8x8xf32>
    %38 = arith.mulf %36, %37 : vector<2x8x8xf32>
    %39 = arith.addf %34, %38 : vector<2x8x8xf32>
    %40 = vector.shape_cast %27 : vector<8x8xf32> to vector<1x8x8xf32>
    %41 = vector.broadcast %40 : vector<1x8x8xf32> to vector<2x8x8xf32>
    %cst_20 = arith.constant dense<0.000000e+00> : vector<2x8x8xf32>
    %42 = tpu.matmul %41, %39, %cst_20 {dimension_numbers = #tpu.dot_dimension_numbers<[2], [1], [1], [2], [0, 0, 0, 1, 1, 2], [0], [0]>} : vector<2x8x8xf32>, vector<2x8x8xf32>, vector<2x8x8xf32> -> vector<2x8x8xf32>
    %43 = vector.broadcast %14 : vector<2x8x1xf32> to vector<2x8x8xf32>
    %44 = arith.addf %43, %42 : vector<2x8x8xf32>
    %45 = arith.cmpi sge, %24, %23 : vector<8x8xi32>
    %46 = arith.subi %24, %23 : vector<8x8xi32>
    %c10_i32 = arith.constant 10 : i32
    %47 = vector.broadcast %c10_i32 : i32 to vector<8x8xi32>
    %48 = arith.cmpi slt, %46, %47 : vector<8x8xi32>
    %49 = arith.andi %45, %48 : vector<8x8xi1>
    %50 = vector.shape_cast %49 : vector<8x8xi1> to vector<1x8x8xi1>
    %cst_21 = arith.constant 0.000000e+00 : f32
    %51 = vector.broadcast %cst_21 : f32 to vector<2x8x1xf32>
    %52 = arith.cmpf ogt, %17, %51 : vector<2x8x1xf32>
    %53 = vector.broadcast %50 : vector<1x8x8xi1> to vector<2x8x8xi1>
    %54 = vector.broadcast %52 : vector<2x8x1xi1> to vector<2x8x8xi1>
    %55 = arith.andi %53, %54 : vector<2x8x8xi1>
    %cst_22 = arith.constant 0.000000e+00 : f32
    %56 = vector.broadcast %cst_22 : f32 to vector<2x1x8xf32>
    %57 = arith.cmpf ogt, %18, %56 : vector<2x1x8xf32>
    %58 = vector.broadcast %57 : vector<2x1x8xi1> to vector<2x8x8xi1>
    %59 = arith.andi %55, %58 : vector<2x8x8xi1>
    %cst_23 = arith.constant 0xFF800000 : f32
    %60 = vector.broadcast %cst_23 : f32 to vector<2x8x8xf32>
    %61 = arith.select %59, %44, %60 : vector<2x8x8xi1>, vector<2x8x8xf32>
    %c0_24 = arith.constant 0 : index
    %c0_25 = arith.constant 0 : index
    %c0_26 = arith.constant 0 : index
    %62 = vector.load %arg10[%c0_24, %c0_25, %c0_26] : memref<2x8x8xf32, #tpu.memory_space<vmem>>, vector<2x8x8xf32>
    tpu.vector_store %arg10[%c0_24, %c0_25, %c0_26], %61 {strides = array<i32>} : memref<2x8x8xf32, #tpu.memory_space<vmem>>, vector<2x8x8xf32>,
    %63 = vector.shape_cast %5 : vector<16x768xf32> to vector<2x8x768xf32>
    %64 = arith.truncf %63 : vector<2x8x768xf32> to vector<2x8x768xbf16>
    %c0_27 = arith.constant 0 : index
    %c0_28 = arith.constant 0 : index
    %65 = vector.load %arg8[%c0_27, %c0_28] : memref<36x8xbf16, #tpu.memory_space<vmem>>, vector<36x8xbf16>
    %66 = vector.shape_cast %65 : vector<36x8xbf16> to vector<1x36x8xbf16>
    %67 = vector.broadcast %66 : vector<1x36x8xbf16> to vector<2x36x8xbf16>
    %cst_29 = arith.constant dense<0.000000e+00> : vector<2x36x768xf32>
    %68 = tpu.matmul %67, %64, %cst_29 {dimension_numbers = #tpu.dot_dimension_numbers<[2], [1], [1], [2], [0, 0, 0, 1, 1, 2], [0], [0]>} : vector<2x36x8xbf16>, vector<2x8x768xbf16>, vector<2x36x768xf32> -> vector<2x36x768xf32>
    %69 = arith.truncf %68 : vector<2x36x768xf32> to vector<2x36x768xbf16>
    %c0_30 = arith.constant 0 : index
    %c0_31 = arith.constant 0 : index
    %c0_32 = arith.constant 0 : index
    %70 = vector.load %arg11[%c0_30, %c0_31, %c0_32] : memref<2x36x768xbf16, #tpu.memory_space<vmem>>, vector<2x36x768xbf16>
    tpu.vector_store %arg11[%c0_30, %c0_31, %c0_32], %69 {strides = array<i32>} : memref<2x36x768xbf16, #tpu.memory_space<vmem>>, vector<2x36x768xbf16>,
    return
  }
  func.func @transform_0(%arg0: i32) -> (i32, i32) {
    %c0_i32 = arith.constant 0 : i32
    %c0_i32_0 = arith.constant 0 : i32
    return %arg0, %c0_i32 : i32, i32
  }
  func.func @transform_1(%arg0: i32) -> (i32, i32, i32) {
    %c0_i32 = arith.constant 0 : i32
    %c0_i32_0 = arith.constant 0 : i32
    %c0_i32_1 = arith.constant 0 : i32
    return %arg0, %c0_i32, %c0_i32_0 : i32, i32, i32
  }
  func.func @transform_2(%arg0: i32) -> (i32, i32, i32) {
    %c0_i32 = arith.constant 0 : i32
    %c0_i32_0 = arith.constant 0 : i32
    %c0_i32_1 = arith.constant 0 : i32
    return %arg0, %c0_i32, %c0_i32_0 : i32, i32, i32
  }
  func.func @transform_3(%arg0: i32) -> (i32, i32) {
    %c0_i32 = arith.constant 0 : i32
    %c0_i32_0 = arith.constant 0 : i32
    %c0_i32_1 = arith.constant 0 : i32
    return %c0_i32, %c0_i32_0 : i32, i32
  }
  func.func @transform_4(%arg0: i32) -> (i32, i32) {
    %c0_i32 = arith.constant 0 : i32
    %c0_i32_0 = arith.constant 0 : i32
    %c0_i32_1 = arith.constant 0 : i32
    return %c0_i32, %c0_i32_0 : i32, i32
  }
  func.func @transform_5(%arg0: i32) -> (i32, i32) {
    %c0_i32 = arith.constant 0 : i32
    %c0_i32_0 = arith.constant 0 : i32
    %c0_i32_1 = arith.constant 0 : i32
    return %c0_i32, %c0_i32_0 : i32, i32
  }
  func.func @transform_6(%arg0: i32) -> (i32, i32) {
    %c0_i32 = arith.constant 0 : i32
    %c0_i32_0 = arith.constant 0 : i32
    %c0_i32_1 = arith.constant 0 : i32
    return %c0_i32, %c0_i32_0 : i32, i32
  }
  func.func @transform_7(%arg0: i32) -> (i32, i32) {
    %c0_i32 = arith.constant 0 : i32
    %c0_i32_0 = arith.constant 0 : i32
    %c0_i32_1 = arith.constant 0 : i32
    return %c0_i32, %c0_i32_0 : i32, i32
  }
  func.func @transform_8(%arg0: i32) -> (i32, i32) {
    %c0_i32 = arith.constant 0 : i32
    %c0_i32_0 = arith.constant 0 : i32
    return %arg0, %c0_i32 : i32, i32
  }
  func.func @transform_9(%arg0: i32) -> (i32, i32, i32) {
    %c0_i32 = arith.constant 0 : i32
    %c0_i32_0 = arith.constant 0 : i32
    %c0_i32_1 = arith.constant 0 : i32
    return %arg0, %c0_i32, %c0_i32_0 : i32, i32, i32
  }
  func.func @transform_10(%arg0: i32) -> (i32, i32, i32) {
    %c0_i32 = arith.constant 0 : i32
    %c0_i32_0 = arith.constant 0 : i32
    %c0_i32_1 = arith.constant 0 : i32
    return %arg0, %c0_i32, %c0_i32_0 : i32, i32, i32
  }
}

</mosaic_0001>

<bundles_post_ra>
// kernel: tpu_custom_call.1
= control target key start
LH: loop header
LB: loop body
LE: loop exit
PB: predicated region body
PF: predicated region fallthrough
CT: control target
= control target key end

     0   :  { %16 = vsyncpa [#allocation3], 0  ;;  %s5557_s0 = inlined_call_operand.hbm [shape: bf16[16,768], index: 0, kind: input, shape index: {}]   ;;  %s5558_s1 = inlined_call_operand.vmem [shape: f32[2,8,1], index: 1, kind: input, shape index: {}]   ;;  %s5559_s2 = inlined_call_operand.hbm [shape: f32[2,1,8], index: 2, kind: input, shape index: {}]   ;;  %s5560_s3 = inlined_call_operand.hbm [shape: bf16[768,768], index: 3, kind: input, shape index: {}]   ;;  %s5561_s4 = inlined_call_operand.hbm [shape: f32[1,768], index: 4, kind: input, shape index: {}]   ;;  %s5562_s5 = inlined_call_operand.hbm [shape: bf16[768,128], index: 5, kind: input, shape index: {}]   ;;  %s5563_s6 = inlined_call_operand.hbm [shape: f32[1,128], index: 6, kind: input, shape index: {}]   ;;  %s5564_s7 = inlined_call_operand.vmem [shape: bf16[36,8], index: 7, kind: input, shape index: {}]   ;;  %s5565_s8 = inlined_call_operand.hbm [shape: bf16[16,768], index: 8, kind: output, shape index: {0}]   ;;  %s5566_s9 = inlined_call_operand.hbm [shape: f32[2,8,8], index: 9, kind: output, shape index: {1}]   ;;  %s5567_s10 = inlined_call_operand.vmem [shape: bf16[2,36,768], index: 10, kind: output, shape index: {2}]  }
   0x1   :  { %17 = vsyncpa [#allocation6], 0 }
   0x2   :  { %18 = vsyncpa [#allocation9], 0 }
   0x3   :  { %19 = vsyncpa [#allocation12], 0 }
   0x4   :  { %20 = vsyncpa [#allocation4], 0 }
   0x5   :  { %21 = vsyncpa [#allocation15], 0  ;;  %s5070_s13 = smov [#allocation5]   ;;  %s4882_s17 = scalar_lea.hbm %s5559_s2, 32 }
   0x6   :  { %s41_s14 = sshll.u32 %s5070_s13, 4  ;;  %p4883_p0 = scmp.ne.s32.totalorder %s5559_s2, %s4882_s17  ;;  %s42_s14 = int_to_ptr.vmem [resolvable:$true] %s41_s14 }
   0x7   :  { %p4886_p1 = scmp.lt.u32.totalorder %s4882_s17, %s5559_s2 }
   0x9   :  { %p4888_p2 = pnand %p4886_p1, %p4883_p0 }
   0xb   :  { %4891 = shalt.err (!%p4888_p2)
}
   0xc   :  { %s4892_s22 = scalar_lea.vmem %s42_s14, 32  ;;  %p4897_p4 = scmp.lt.s32.totalorder %s42_s14, %s42_s14 }
   0xd   :  { %p4893_p3 = scmp.ne.s32.totalorder %s42_s14, %s4892_s22  ;;  %p4898_p5 = scmp.lt.s32.totalorder %s4892_s22, %s4892_s22 }
   0xf   :  { %p4899_p6 = por %p4898_p5, %p4897_p4 }
  0x11   :  { %p4900_p7 = pnand %p4899_p6, %p4893_p3 }
  0x13   :  { %4903 = shalt.err (!%p4900_p7)
}
  0x14   :  { %s5071_s23 = smov 16   ;;  %s5072_s24 = smov 1  }
  0x15   :  { %47 = dma.hbm_to_vmem [thread:$0]  %s5559_s2, 32, %s42_s14, [#allocation6], %s5071_s23, %s5071_s23, %s5072_s24  }
  0x16   :  { %s5073_s27 = smov [#allocation8]   ;;  %s5074_s29 = smov [#allocation2]  }
  0x17   :  { %s66_s28 = sshll.u32 %s5073_s27, 4  ;;  %s27_s30 = sshll.u32 %s5074_s29, 4  ;;  %s67_s28 = int_to_ptr.vmem [resolvable:$true] %s66_s28  ;;  %s28_s30 = int_to_ptr.vmem [resolvable:$true] %s27_s30 }
  0x18   :  { %s4904_s13 = scalar_lea.hbm %s5561_s4, 96 }
  0x19   :  { %p4905_p8 = scmp.ne.s32.totalorder %s5561_s4, %s4904_s13  ;;  %p4908_p9 = scmp.lt.u32.totalorder %s4904_s13, %s5561_s4 }
  0x1b   :  { %p4910_p10 = pnand %p4908_p9, %p4905_p8 }
  0x1d   :  { %4913 = shalt.err (!%p4910_p10)
}
  0x1e   :  { %s4914_s2 = scalar_lea.vmem %s67_s28, 96  ;;  %p4919_p12 = scmp.lt.s32.totalorder %s67_s28, %s67_s28 }
  0x1f   :  { %p4915_p11 = scmp.ne.s32.totalorder %s67_s28, %s4914_s2  ;;  %p4920_p13 = scmp.lt.s32.totalorder %s4914_s2, %s4914_s2 }
  0x21   :  { %p4921_p0 = por %p4920_p13, %p4919_p12 }
  0x23   :  { %p4922_p1 = pnand %p4921_p0, %p4915_p11 }
  0x25   :  { %4925 = shalt.err (!%p4922_p1)
}
  0x26   :  { %69 = dma.hbm_to_vmem [thread:$0]  %s5561_s4, 96, %s67_s28, [#allocation9]  }
  0x27   :  { %s4926_s22 = scalar_lea.hbm %s5557_s0, 768 }
  0x28   :  { %p4927_p2 = scmp.ne.s32.totalorder %s5557_s0, %s4926_s22  ;;  %p4930_p3 = scmp.lt.u32.totalorder %s4926_s22, %s5557_s0 }
  0x2a   :  { %p4932_p4 = pnand %p4930_p3, %p4927_p2 }
  0x2c   :  { %4935 = shalt.err (!%p4932_p4)
}
  0x2d   :  { %s4936_s27 = scalar_lea.vmem %s28_s30, 768  ;;  %p4941_p6 = scmp.lt.s32.totalorder %s28_s30, %s28_s30 }
  0x2e   :  { %p4937_p5 = scmp.ne.s32.totalorder %s28_s30, %s4936_s27  ;;  %p4942_p7 = scmp.lt.s32.totalorder %s4936_s27, %s4936_s27 }
  0x30   :  { %p4943_p8 = por %p4942_p7, %p4941_p6 }
  0x32   :  { %p4944_p9 = pnand %p4943_p8, %p4937_p5 }
  0x34   :  { %4947 = shalt.err (!%p4944_p9)
}
  0x35   :  { %s5075_s4 = smov 384   ;;  %s5076_s28 = smov 24  }
  0x36   :  { %33 = dma.hbm_to_vmem [thread:$0]  %s5557_s0, 768, %s28_s30, [#allocation3], %s5075_s4, %s5075_s4, %s5076_s28  }
  0x37   :  { %s5077_s12 = smov [#allocation7]   ;;  %s5078_s15 = smov [#allocation10]  }
  0x38   :  { %s53_s13 = sshll.u32 %s5077_s12, 4  ;;  %s75_s16 = sshll.u32 %s5078_s15, 4  ;;  %s54_s13 = int_to_ptr.vmem [resolvable:$true] %s53_s13  ;;  %s76_s16 = int_to_ptr.vmem [resolvable:$true] %s75_s16 }
  0x39   :  { %s4948_s2 = scalar_lea.hbm %s5560_s3, 36864 }
  0x3a   :  { %p4949_p10 = scmp.ne.s32.totalorder %s5560_s3, %s4948_s2  ;;  %p4952_p11 = scmp.lt.u32.totalorder %s4948_s2, %s5560_s3 }
  0x3c   :  { %p4954_p12 = pnand %p4952_p11, %p4949_p10 }
  0x3e   :  { %4957 = shalt.err (!%p4954_p12)
}
  0x3f   :  { %s4958_s0 = scalar_lea.vmem %s54_s13, 36864  ;;  %p4963_p0 = scmp.lt.s32.totalorder %s54_s13, %s54_s13 }
  0x40   :  { %p4959_p13 = scmp.ne.s32.totalorder %s54_s13, %s4958_s0  ;;  %p4964_p1 = scmp.lt.s32.totalorder %s4958_s0, %s4958_s0 }
  0x42   :  { %p4965_p2 = por %p4964_p1, %p4963_p0 }
  0x44   :  { %p4966_p3 = pnand %p4965_p2, %p4959_p13 }
  0x46   :  { %4969 = shalt.err (!%p4966_p3)
}
  0x47   :  { %59 = dma.hbm_to_vmem [thread:$0]  %s5560_s3, 36864, %s54_s13, [#allocation6], %s5075_s4, %s5075_s4, %s5076_s28  }
  0x48   :  { %s4970_s25 = scalar_lea.hbm %s5562_s5, 6144 }
  0x49   :  { %p4971_p4 = scmp.ne.s32.totalorder %s5562_s5, %s4970_s25  ;;  %p4974_p5 = scmp.lt.u32.totalorder %s4970_s25, %s5562_s5 }
  0x4b   :  { %p4976_p6 = pnand %p4974_p5, %p4971_p4 }
  0x4d   :  { %4979 = shalt.err (!%p4976_p6)
}
  0x4e   :  { %s4980_s12 = scalar_lea.vmem %s76_s16, 6144  ;;  %p4985_p8 = scmp.lt.s32.totalorder %s76_s16, %s76_s16 }
  0x4f   :  { %p4981_p7 = scmp.ne.s32.totalorder %s76_s16, %s4980_s12  ;;  %p4986_p9 = scmp.lt.s32.totalorder %s4980_s12, %s4980_s12 }
  0x51   :  { %p4987_p10 = por %p4986_p9, %p4985_p8 }
  0x53   :  { %p4988_p11 = pnand %p4987_p10, %p4981_p7 }
  0x55   :  { %4991 = shalt.err (!%p4988_p11)
}
  0x56   :  { %s5079_s3 = smov 64   ;;  %s5080_s13 = smov 4  }
  0x57   :  { %81 = dma.hbm_to_vmem [thread:$0]  %s5562_s5, 6144, %s76_s16, [#allocation9], %s5079_s3, %s5079_s3, %s5080_s13  }
  0x58   :  { %s5081_s18 = smov [#allocation11]   ;;  %s4992_s20 = scalar_lea.hbm %s5563_s6, 16 }
  0x59   :  { %s88_s2 = sshll.u32 %s5081_s18, 4  ;;  %p4993_p12 = scmp.ne.s32.totalorder %s5563_s6, %s4992_s20  ;;  %s89_s2 = int_to_ptr.vmem [resolvable:$true] %s88_s2 }
  0x5a   :  { %p4996_p13 = scmp.lt.u32.totalorder %s4992_s20, %s5563_s6 }
  0x5c   :  { %p4998_p0 = pnand %p4996_p13, %p4993_p12 }
  0x5e   :  { %5001 = shalt.err (!%p4998_p0)
}
  0x5f   :  { %s5002_s23 = scalar_lea.vmem %s89_s2, 16  ;;  %s5006_s5 = scalar_lea.vmem %s89_s2, 32 }
  0x60   :  { %p5003_p1 = scmp.ne.s32.totalorder %s89_s2, %s5002_s23  ;;  %p5007_p2 = scmp.lt.s32.totalorder %s89_s2, %s89_s2 }
  0x61   :  { %p5008_p3 = scmp.lt.s32.totalorder %s5006_s5, %s5002_s23 }
  0x63   :  { %p5009_p4 = por %p5008_p3, %p5007_p2 }
  0x65   :  { %p5010_p5 = pnand %p5009_p4, %p5003_p1 }
  0x67   :  { %5013 = shalt.err (!%p5010_p5)
}
  0x68   :  { %91 = dma.hbm_to_vmem [thread:$0]  %s5563_s6, 16, %s89_s2, [#allocation12]  }
  0x69   :  { %5058 = dma.done.wait [#allocation3], 768  }
  0x6a   :  { %5059 = vsyncadd [#allocation3], 4294966528 }
  0x6b   :  { %5060 = dma.done.wait [#allocation6], 36896  }
  0x6c   :  { %5061 = vsyncadd [#allocation6], 4294930400 }
  0x6d   :  { %5062 = dma.done.wait [#allocation9], 6240  }
  0x6e   :  { %5063 = vsyncadd [#allocation9], 4294961056 }
  0x6f   :  { %5064 = dma.done.wait [#allocation12], 16  }
  0x70   :  { %5065 = vsyncadd [#allocation12], 4294967280  ;;  %v4385_v0 = vld [vmem:[#allocation7 + $0xc] ss:$24 sps:$4 sm:$0xff]   ;;  %v4387_v1 = vld [vmem:[#allocation7 + $0x8] ss:$24 sps:$4 sm:$0xff]  }
  0x71   :  { %2038 = vmatprep.subr.bf16.mxu1 %v4385_v0  ;;  %v4388_v2 = vld [vmem:[#allocation7 + $0x3c] ss:$24 sps:$4 sm:$0xff]   ;;  %v4390_v3 = vld [vmem:[#allocation7 + $0x38] ss:$24 sps:$4 sm:$0xff]   ;;  %v4391_v4 = vld [vmem:[#allocation7 + $0x6c] ss:$24 sps:$4 sm:$0xff]  }
  0x72   :  { %2039 = vmatpush1.bf16.msra.mxu1 %v4387_v1  ;;  %v4393_v5 = vld [vmem:[#allocation7 + $0x68] ss:$24 sps:$4 sm:$0xff]   ;;  %v4394_v6 = vld [vmem:[#allocation7 + $0x9c] ss:$24 sps:$4 sm:$0xff]   ;;  %v4396_v7 = vld [vmem:[#allocation7 + $0x98] ss:$24 sps:$4 sm:$0xff]  }
  0x73   :  { %2040 = vmatprep.subr.bf16.mxu1 %v4388_v2  ;;  %v4397_v8 = vld [vmem:[#allocation7 + $0xcc] ss:$24 sps:$4 sm:$0xff]   ;;  %v4399_v9 = vld [vmem:[#allocation7 + $0xc8] ss:$24 sps:$4 sm:$0xff]   ;;  %v4400_v10 = vld [vmem:[#allocation7 + $0xfc] ss:$24 sps:$4 sm:$0xff]  }
  0x74   :  { %v4402_v11 = vld [vmem:[#allocation7 + $0xf8] ss:$24 sps:$4 sm:$0xff]   ;;  %v4403_v12 = vld [vmem:[#allocation7 + $0x12c] ss:$24 sps:$4 sm:$0xff]   ;;  %v4405_v15 = vld [vmem:[#allocation7 + $0x128] ss:$24 sps:$4 sm:$0xff]  }
  0x75   :  { %v4430_v13 = vld [vmem:[#allocation7 + $0x4] ss:$24 sps:$4 sm:$0xff]   ;;  %v4432_v14 = vld [vmem:[#allocation7] ss:$24 sps:$4 sm:$0xff]   ;;  %v4436_v17 = vld [vmem:[#allocation7 + $0x34] ss:$24 sps:$4 sm:$0xff]  }
  0x76   :  { %2041 = vmatpush1.bf16.msra.mxu1 %v4390_v3  ;;  %v4406_v16 = vld [vmem:[#allocation7 + $0x15c] ss:$24 sps:$4 sm:$0xff]   ;;  %1909 = vmatprep.subr.bf16.mxu0 %v4430_v13  ;;  %v4438_v18 = vld [vmem:[#allocation7 + $0x30] ss:$24 sps:$4 sm:$0xff]   ;;  %v4447_v22 = vld [vmem:[#allocation7 + $0x60] ss:$24 sps:$4 sm:$0xff]  }
  0x77   :  { %2042 = vmatprep.subr.bf16.mxu1 %v4391_v4  ;;  %1910 = vmatpush1.bf16.msra.mxu0 %v4432_v14  ;;  %v4439_v19 = vld [vmem:[#allocation2 + $0x4] ss:$24 sps:$4 sm:$0xff]   ;;  %v4445_v21 = vld [vmem:[#allocation7 + $0x64] ss:$24 sps:$4 sm:$0xff]   ;;  %v4459_v31 = vld [vmem:[#allocation7 + $0xc0] ss:$24 sps:$4 sm:$0xff]  }
  0x78   :  { %1911 = vmatprep.subr.bf16.mxu0 %v4436_v17  ;;  %v4408_v20 = vld [vmem:[#allocation7 + $0x158] ss:$24 sps:$4 sm:$0xff]   ;;  %2070 = vmatprep.mubr.bf16.mxu1 %v4439_v19  ;;  %v4409_v23 = vld [vmem:[#allocation7 + $0x18c] ss:$24 sps:$4 sm:$0xff]   ;;  %v4411_v24 = vld [vmem:[#allocation7 + $0x188] ss:$24 sps:$4 sm:$0xff]  }
  0x79   :  { %1941 = vmatprep.mubr.bf16.mxu0 %v4439_v19  ;;  %v4451_v25 = vld [vmem:[#allocation7 + $0x94] ss:$24 sps:$4 sm:$0xff]   ;;  %v4453_v27 = vld [vmem:[#allocation7 + $0x90] ss:$24 sps:$4 sm:$0xff]   ;;  %v4457_v28 = vld [vmem:[#allocation7 + $0xc4] ss:$24 sps:$4 sm:$0xff]  }
  0x7a   :  { %2043 = vmatpush1.bf16.msra.mxu1 %v4393_v5  ;;  %v4412_v26 = vld [vmem:[#allocation7 + $0x1bc] ss:$24 sps:$4 sm:$0xff]   ;;  %v4414_v29 = vld [vmem:[#allocation7 + $0x1b8] ss:$24 sps:$4 sm:$0xff]   ;;  %v4415_v30 = vld [vmem:[#allocation7 + $0x1ec] ss:$24 sps:$4 sm:$0xff]  }
  0x7b   :  { %2044 = vmatprep.subr.bf16.mxu1 %v4394_v6  ;;  %1912 = vmatpush1.bf16.msra.mxu0 %v4438_v18  ;;  %v4463_v32 = vld [vmem:[#allocation7 + $0xf4] ss:$24 sps:$4 sm:$0xff]   ;;  %v4417_v33 = vld [vmem:[#allocation7 + $0x1e8] ss:$24 sps:$4 sm:$0xff]   ;;  %v4469_v36 = vld [vmem:[#allocation7 + $0x124] ss:$24 sps:$4 sm:$0xff]  }
  0x7c   :  { %1913 = vmatprep.subr.bf16.mxu0 %v4445_v21  ;;  %v4418_v34 = vld [vmem:[#allocation7 + $0x21c] ss:$24 sps:$4 sm:$0xff]   ;;  %v4465_v35 = vld [vmem:[#allocation7 + $0xf0] ss:$24 sps:$4 sm:$0xff]   ;;  %v4421_v38 = vld [vmem:[#allocation7 + $0x24c] ss:$24 sps:$4 sm:$0xff]  }
  0x7d   :  { %v4420_v37 = vld [vmem:[#allocation7 + $0x218] ss:$24 sps:$4 sm:$0xff]   ;;  %v4475_v40 = vld [vmem:[#allocation7 + $0x154] ss:$24 sps:$4 sm:$0xff]   ;;  %v4423_v41 = vld [vmem:[#allocation7 + $0x248] ss:$24 sps:$4 sm:$0xff]  }
  0x7e   :  { %2045 = vmatpush1.bf16.msra.mxu1 %v4396_v7  ;;  %v4471_v39 = vld [vmem:[#allocation7 + $0x120] ss:$24 sps:$4 sm:$0xff]   ;;  %v4424_v42 = vld [vmem:[#allocation7 + $0x27c] ss:$24 sps:$4 sm:$0xff]   ;;  %v4477_v43 = vld [vmem:[#allocation7 + $0x150] ss:$24 sps:$4 sm:$0xff]  }
  0x7f   :  { %2046 = vmatprep.subr.bf16.mxu1 %v4397_v8  ;;  %1914 = vmatpush1.bf16.msra.mxu0 %v4447_v22  ;;  %v4481_v44 = vld [vmem:[#allocation7 + $0x184] ss:$24 sps:$4 sm:$0xff]   ;;  %v4426_v45 = vld [vmem:[#allocation7 + $0x278] ss:$24 sps:$4 sm:$0xff]   ;;  %v4487_v48 = vld [vmem:[#allocation7 + $0x1b4] ss:$24 sps:$4 sm:$0xff]  }
  0x80   :  { %1915 = vmatprep.subr.bf16.mxu0 %v4451_v25  ;;  %v4427_v46 = vld [vmem:[#allocation7 + $0x2ac] ss:$24 sps:$4 sm:$0xff]   ;;  %v4483_v47 = vld [vmem:[#allocation7 + $0x180] ss:$24 sps:$4 sm:$0xff]   ;;  %v4433_v50 = vld [vmem:[#allocation7 + $0x2dc] ss:$24 sps:$4 sm:$0xff]  }
  0x81   :  { %v4429_v49 = vld [vmem:[#allocation7 + $0x2a8] ss:$24 sps:$4 sm:$0xff]   ;;  %v4493_v52 = vld [vmem:[#allocation7 + $0x1e4] ss:$24 sps:$4 sm:$0xff]   ;;  %v4435_v53 = vld [vmem:[#allocation7 + $0x2d8] ss:$24 sps:$4 sm:$0xff]  }
  0x82   :  { %2047 = vmatpush1.bf16.msra.mxu1 %v4399_v9  ;;  %v4489_v51 = vld [vmem:[#allocation7 + $0x1b0] ss:$24 sps:$4 sm:$0xff]   ;;  %v4443_v54 = vld [vmem:[#allocation7 + $0x30c] ss:$24 sps:$4 sm:$0xff]   ;;  %v4495_v55 = vld [vmem:[#allocation7 + $0x1e0] ss:$24 sps:$4 sm:$0xff]  }
  0x83   :  { %2048 = vmatprep.subr.bf16.mxu1 %v4400_v10  ;;  %1916 = vmatpush1.bf16.msra.mxu0 %v4453_v27  ;;  %v4499_v56 = vld [vmem:[#allocation7 + $0x214] ss:$24 sps:$4 sm:$0xff]   ;;  %v4441_v57 = vld [vmem:[#allocation7 + $0x308] ss:$24 sps:$4 sm:$0xff]   ;;  %v4505_v61 = vld [vmem:[#allocation7 + $0x244] ss:$24 sps:$4 sm:$0xff]  }
  0x84   :  { %1917 = vmatprep.subr.bf16.mxu0 %v4457_v28  ;;  %v4444_v58 = vld [vmem:[#allocation2] ss:$24 sps:$4 sm:$0xff]   ;;  %v4450_v59 = vld [vmem:[#allocation7 + $0x33c] ss:$24 sps:$4 sm:$0xff]   ;;  %v4507_v0 = vld [vmem:[#allocation7 + $0x240] ss:$24 sps:$4 sm:$0xff]  }
  0x85   :  { %v4501_v60 = vld [vmem:[#allocation7 + $0x210] ss:$24 sps:$4 sm:$0xff]   ;;  %v4456_v63 = vld [vmem:[#allocation7 + $0x36c] ss:$24 sps:$4 sm:$0xff]   ;;  %v4462_v4 = vld [vmem:[#allocation7 + $0x39c] ss:$24 sps:$4 sm:$0xff]  }
  0x86   :  { %2049 = vmatpush1.bf16.msra.mxu1 %v4402_v11  ;;  %v4448_v62 = vld [vmem:[#allocation7 + $0x338] ss:$24 sps:$4 sm:$0xff]   ;;  %v4511_v1 = vld [vmem:[#allocation7 + $0x274] ss:$24 sps:$4 sm:$0xff]   ;;  %v4454_v3 = vld [vmem:[#allocation7 + $0x368] ss:$24 sps:$4 sm:$0xff]  }
  0x87   :  { %2050 = vmatprep.subr.bf16.mxu1 %v4403_v12  ;;  %1918 = vmatpush1.bf16.msra.mxu0 %v4459_v31  ;;  %v4538_v2 = vld [vmem:[#allocation2 + $0xc] ss:$24 sps:$4 sm:$0xff]   ;;  %v4468_v8 = vld [vmem:[#allocation7 + $0x3cc] ss:$24 sps:$4 sm:$0xff]   ;;  %v4466_v11 = vld [vmem:[#allocation7 + $0x3c8] ss:$24 sps:$4 sm:$0xff]  }
  0x88   :  { %1919 = vmatprep.subr.bf16.mxu0 %v4463_v32  ;;  %v4513_v5 = vld [vmem:[#allocation7 + $0x270] ss:$24 sps:$4 sm:$0xff]   ;;  %v4517_v6 = vld [vmem:[#allocation7 + $0x2a4] ss:$24 sps:$4 sm:$0xff]   ;;  %v4519_v9 = vld [vmem:[#allocation7 + $0x2a0] ss:$24 sps:$4 sm:$0xff]  }
  0x89   :  { %v4460_v7 = vld [vmem:[#allocation7 + $0x398] ss:$24 sps:$4 sm:$0xff]   ;;  %v4523_v10 = vld [vmem:[#allocation7 + $0x2d4] ss:$24 sps:$4 sm:$0xff]   ;;  %v4531_v14 = vld [vmem:[#allocation7 + $0x304] ss:$24 sps:$4 sm:$0xff]  }
  0x8a   :  { %2051 = vmatpush1.bf16.msra.mxu1 %v4405_v15  ;;  %v4474_v12 = vld [vmem:[#allocation7 + $0x3fc] ss:$24 sps:$4 sm:$0xff]   ;;  %v4525_v13 = vld [vmem:[#allocation7 + $0x2d0] ss:$24 sps:$4 sm:$0xff]   ;;  %v4529_v17 = vld [vmem:[#allocation7 + $0x300] ss:$24 sps:$4 sm:$0xff]  }
  0x8b   :  { %2052 = vmatprep.subr.bf16.mxu1 %v4406_v16  ;;  %1920 = vmatpush1.bf16.msra.mxu0 %v4465_v35  ;;  %v4472_v15 = vld [vmem:[#allocation7 + $0x3f8] ss:$24 sps:$4 sm:$0xff]   ;;  %v4480_v16 = vld [vmem:[#allocation7 + $0x42c] ss:$24 sps:$4 sm:$0xff]   ;;  %v4478_v19 = vld [vmem:[#allocation7 + $0x428] ss:$24 sps:$4 sm:$0xff]  }
  0x8c   :  { %1921 = vmatprep.subr.bf16.mxu0 %v4469_v36  ;;  %v4537_v18 = vld [vmem:[#allocation7 + $0x334] ss:$24 sps:$4 sm:$0xff]   ;;  %v4535_v21 = vld [vmem:[#allocation7 + $0x330] ss:$24 sps:$4 sm:$0xff]   ;;  %v4546_v22 = vld [vmem:[#allocation7 + $0x364] ss:$24 sps:$4 sm:$0xff]  }
  0x8d   :  { %v4544_v25 = vld [vmem:[#allocation7 + $0x360] ss:$24 sps:$4 sm:$0xff]   ;;  %v4498_v28 = vld [vmem:[#allocation7 + $0x4bc] ss:$24 sps:$4 sm:$0xff]   ;;  %v4504_v32 = vld [vmem:[#allocation7 + $0x4ec] ss:$24 sps:$4 sm:$0xff]  }
  0x8e   :  { %2053 = vmatpush1.bf16.msra.mxu1 %v4408_v20  ;;  %v4486_v20 = vld [vmem:[#allocation7 + $0x45c] ss:$24 sps:$4 sm:$0xff]   ;;  %v4490_v27 = vld [vmem:[#allocation7 + $0x488] ss:$24 sps:$4 sm:$0xff]   ;;  %v4496_v31 = vld [vmem:[#allocation7 + $0x4b8] ss:$24 sps:$4 sm:$0xff]  }
  0x8f   :  { %2054 = vmatprep.subr.bf16.mxu1 %v4409_v23  ;;  %1922 = vmatpush1.bf16.msra.mxu0 %v4471_v39  ;;  %v4484_v23 = vld [vmem:[#allocation7 + $0x458] ss:$24 sps:$4 sm:$0xff]   ;;  %v4502_v35 = vld [vmem:[#allocation7 + $0x4e8] ss:$24 sps:$4 sm:$0xff]   ;;  %v4510_v36 = vld [vmem:[#allocation7 + $0x51c] ss:$24 sps:$4 sm:$0xff]  }
  0x90   :  { %1923 = vmatprep.subr.bf16.mxu0 %v4475_v40  ;;  %v4508_v39 = vld [vmem:[#allocation7 + $0x518] ss:$24 sps:$4 sm:$0xff]   ;;  %v4516_v40 = vld [vmem:[#allocation7 + $0x54c] ss:$24 sps:$4 sm:$0xff]   ;;  %s5085_s6 = smov 126   ;;  %vm5086_vm1 = vmmov 0  }
  0x91   :  { %vm2902_vm5 = vcmask 64512   ;;  %vm3132_vm6 = vcmask 1043456  }
  0x92   :  { %2055 = vmatpush1.bf16.msra.mxu1 %v4411_v24  ;;  %v4492_v24 = vld [vmem:[#allocation7 + $0x48c] ss:$24 sps:$4 sm:$0xff]  }
  0x93   :  { %2056 = vmatprep.subr.bf16.mxu1 %v4412_v26  ;;  %1924 = vmatpush1.bf16.msra.mxu0 %v4477_v43  ;;  %v4552_v26 = vld [vmem:[#allocation7 + $0x394] ss:$24 sps:$4 sm:$0xff]   ;;  %v4514_v43 = vld [vmem:[#allocation7 + $0x548] ss:$24 sps:$4 sm:$0xff]  }
  0x94   :  { %1925 = vmatprep.subr.bf16.mxu0 %v4481_v44  ;;  %v4522_v44 = vld [vmem:[#allocation7 + $0x57c] ss:$24 sps:$4 sm:$0xff]  }
  0x96   :  { %2057 = vmatpush1.bf16.msra.mxu1 %v4414_v29  ;;  %v4550_v29 = vld [vmem:[#allocation7 + $0x390] ss:$24 sps:$4 sm:$0xff]  }
  0x97   :  { %2058 = vmatprep.subr.bf16.mxu1 %v4415_v30  ;;  %1926 = vmatpush1.bf16.msra.mxu0 %v4483_v47  ;;  %v4558_v30 = vld [vmem:[#allocation7 + $0x3c4] ss:$24 sps:$4 sm:$0xff]   ;;  %v4520_v47 = vld [vmem:[#allocation7 + $0x578] ss:$24 sps:$4 sm:$0xff]  }
  0x98   :  { %1927 = vmatprep.subr.bf16.mxu0 %v4487_v48  ;;  %v4580_v48 = vld [vmem:[#allocation7 + $0x480] ss:$24 sps:$4 sm:$0xff]  }
  0x9a   :  { %2059 = vmatpush1.bf16.msra.mxu1 %v4417_v33  ;;  %v4556_v33 = vld [vmem:[#allocation7 + $0x3c0] ss:$24 sps:$4 sm:$0xff]  }
  0x9b   :  { %2060 = vmatprep.subr.bf16.mxu1 %v4418_v34  ;;  %1928 = vmatpush1.bf16.msra.mxu0 %v4489_v51  ;;  %v4564_v34 = vld [vmem:[#allocation7 + $0x3f4] ss:$24 sps:$4 sm:$0xff]   ;;  %v4526_v51 = vld [vmem:[#allocation7 + $0x5a8] ss:$24 sps:$4 sm:$0xff]  }
  0x9c   :  { %1929 = vmatprep.subr.bf16.mxu0 %v4493_v52  ;;  %v4534_v52 = vld [vmem:[#allocation7 + $0x5dc] ss:$24 sps:$4 sm:$0xff]  }
  0x9e   :  { %2061 = vmatpush1.bf16.msra.mxu1 %v4420_v37  ;;  %v4562_v37 = vld [vmem:[#allocation7 + $0x3f0] ss:$24 sps:$4 sm:$0xff]  }
  0x9f   :  { %2062 = vmatprep.subr.bf16.mxu1 %v4421_v38  ;;  %1930 = vmatpush1.bf16.msra.mxu0 %v4495_v55  ;;  %v4570_v38 = vld [vmem:[#allocation7 + $0x424] ss:$24 sps:$4 sm:$0xff]   ;;  %v4532_v55 = vld [vmem:[#allocation7 + $0x5d8] ss:$24 sps:$4 sm:$0xff]  }
  0xa0   :  { %1931 = vmatprep.subr.bf16.mxu0 %v4499_v56  ;;  %v4542_v56 = vld [vmem:[#allocation7 + $0x60c] ss:$24 sps:$4 sm:$0xff]  }
  0xa2   :  { %2063 = vmatpush1.bf16.msra.mxu1 %v4423_v41  ;;  %v4568_v41 = vld [vmem:[#allocation7 + $0x420] ss:$24 sps:$4 sm:$0xff]  }
  0xa3   :  { %2064 = vmatprep.subr.bf16.mxu1 %v4424_v42  ;;  %1932 = vmatpush1.bf16.msra.mxu0 %v4501_v60  ;;  %v4576_v42 = vld [vmem:[#allocation7 + $0x454] ss:$24 sps:$4 sm:$0xff]  }
  0xa4   :  { %1933 = vmatprep.subr.bf16.mxu0 %v4505_v61  ;;  %v5224_v60 = vld [vmem:[#allocation2 + $0x8] ss:$24 sps:$4 sm:$0xff]  }
  0xa5   :  { %v4549_v61 = vld [vmem:[#allocation7 + $0x63c] ss:$24 sps:$4 sm:$0xff]  }
  0xa6   :  { %2065 = vmatpush1.bf16.msra.mxu1 %v4426_v45  ;;  %v4574_v45 = vld [vmem:[#allocation7 + $0x450] ss:$24 sps:$4 sm:$0xff]  }
  0xa7   :  { %2066 = vmatprep.subr.bf16.mxu1 %v4427_v46  ;;  %1934 = vmatpush1.bf16.msra.mxu0 %v4507_v0  ;;  %v4582_v46 = vld [vmem:[#allocation7 + $0x484] ss:$24 sps:$4 sm:$0xff]   ;;  %v4547_v0 = vld [vmem:[#allocation7 + $0x638] ss:$24 sps:$4 sm:$0xff]  }
  0xa8   :  { %1935 = vmatprep.subr.bf16.mxu0 %v4511_v1  ;;  %v5226_v1 = vld [vmem:[#allocation2 + $0x14] ss:$24 sps:$4 sm:$0xff]  }
  0xaa   :  { %2067 = vmatpush1.bf16.msra.mxu1 %v4429_v49  ;;  %v4528_v49 = vld [vmem:[#allocation7 + $0x5ac] ss:$24 sps:$4 sm:$0xff]  }
  0xab   :  { %2068 = vmatprep.subr.bf16.mxu1 %v4433_v50  ;;  %1936 = vmatpush1.bf16.msra.mxu0 %v4513_v5  ;;  %v4588_v50 = vld [vmem:[#allocation7 + $0x4b4] ss:$24 sps:$4 sm:$0xff]   ;;  %v4553_v5 = vld [vmem:[#allocation7 + $0x668] ss:$24 sps:$4 sm:$0xff]  }
  0xac   :  { %1937 = vmatprep.subr.bf16.mxu0 %v4517_v6  ;;  %v4610_v6 = vld [vmem:[#allocation7 + $0x570] ss:$24 sps:$4 sm:$0xff]  }
  0xae   :  { %2069 = vmatpush1.bf16.msra.mxu1 %v4435_v53  ;;  %v4586_v53 = vld [vmem:[#allocation7 + $0x4b0] ss:$24 sps:$4 sm:$0xff]  }
  0xaf   :  { %2081 = vmatprep.subr.bf16.mxu1 %v4443_v54  ;;  %1938 = vmatpush1.bf16.msra.mxu0 %v4519_v9  ;;  %v4594_v54 = vld [vmem:[#allocation7 + $0x4e4] ss:$24 sps:$4 sm:$0xff]   ;;  %v4559_v9 = vld [vmem:[#allocation7 + $0x698] ss:$24 sps:$4 sm:$0xff]  }
  0xb0   :  { %1939 = vmatprep.subr.bf16.mxu0 %v4523_v10  ;;  %v4567_v10 = vld [vmem:[#allocation7 + $0x6cc] ss:$24 sps:$4 sm:$0xff]  }
  0xb1   :  { %2071 = vmatmul.mubr.bf16.vlgmr.msra.gmra.mrb[0].mxu1 %v4444_v58 }
  0xb2   :  { %2082 = vmatpush1.bf16.msra.mxu1 %v4441_v57  ;;  %2113 = vmatprep.mubr.bf16.mxu1 %v4538_v2  ;;  %v4592_v57 = vld [vmem:[#allocation7 + $0x4e0] ss:$24 sps:$4 sm:$0xff]  }
  0xb3   :  { %2083 = vmatprep.subr.bf16.mxu1 %v4450_v59  ;;  %1940 = vmatpush1.bf16.msra.mxu0 %v4525_v13  ;;  %v4540_v59 = vld [vmem:[#allocation7 + $0x608] ss:$24 sps:$4 sm:$0xff]  }
  0xb4   :  { %1952 = vmatprep.subr.bf16.mxu0 %v4531_v14  ;;  %v4565_v13 = vld [vmem:[#allocation7 + $0x6c8] ss:$24 sps:$4 sm:$0xff]   ;;  %v4573_v14 = vld [vmem:[#allocation7 + $0x6fc] ss:$24 sps:$4 sm:$0xff]  }
  0xb6   :  { %2084 = vmatpush1.bf16.msra.mxu1 %v4448_v62  ;;  %1942 = vmatmul.mubr.bf16.vlgmr.msra.gmra.mrb[0].mxu0 %v4444_v58  ;;  %v4600_v58 = vld [vmem:[#allocation7 + $0x514] ss:$24 sps:$4 sm:$0xff]   ;;  %v4598_v62 = vld [vmem:[#allocation7 + $0x510] ss:$24 sps:$4 sm:$0xff]  }
  0xb7   :  { %2085 = vmatprep.subr.bf16.mxu1 %v4456_v63  ;;  %1953 = vmatpush1.bf16.msra.mxu0 %v4529_v17  ;;  %v4606_v63 = vld [vmem:[#allocation7 + $0x544] ss:$24 sps:$4 sm:$0xff]   ;;  %v4571_v17 = vld [vmem:[#allocation7 + $0x6f8] ss:$24 sps:$4 sm:$0xff]  }
  0xb8   :  { %1954 = vmatprep.subr.bf16.mxu0 %v4537_v18  ;;  %1984 = vmatprep.mubr.bf16.mxu0 %v4538_v2  ;;  %v4555_v2 = vld [vmem:[#allocation7 + $0x66c] ss:$24 sps:$4 sm:$0xff]  }
  0xb9   :  { %v4579_v18 = vld [vmem:[#allocation7 + $0x72c] ss:$24 sps:$4 sm:$0xff]  }
  0xba   :  { %2086 = vmatpush1.bf16.msra.mxu1 %v4454_v3  ;;  %v4604_v3 = vld [vmem:[#allocation7 + $0x540] ss:$24 sps:$4 sm:$0xff]  }
  0xbb   :  { %2087 = vmatprep.subr.bf16.mxu1 %v4462_v4  ;;  %1955 = vmatpush1.bf16.msra.mxu0 %v4535_v21  ;;  %v4612_v4 = vld [vmem:[#allocation7 + $0x574] ss:$24 sps:$4 sm:$0xff]   ;;  %v4577_v21 = vld [vmem:[#allocation7 + $0x728] ss:$24 sps:$4 sm:$0xff]  }
  0xbc   :  { %1956 = vmatprep.subr.bf16.mxu0 %v4546_v22  ;;  %v4585_v22 = vld [vmem:[#allocation7 + $0x75c] ss:$24 sps:$4 sm:$0xff]  }
  0xbe   :  { %2088 = vmatpush1.bf16.msra.mxu1 %v4460_v7  ;;  %v4561_v7 = vld [vmem:[#allocation7 + $0x69c] ss:$24 sps:$4 sm:$0xff]  }
  0xbf   :  { %2089 = vmatprep.subr.bf16.mxu1 %v4468_v8  ;;  %1957 = vmatpush1.bf16.msra.mxu0 %v4544_v25  ;;  %v4618_v8 = vld [vmem:[#allocation7 + $0x5a4] ss:$24 sps:$4 sm:$0xff]   ;;  %v4583_v25 = vld [vmem:[#allocation7 + $0x758] ss:$24 sps:$4 sm:$0xff]  }
  0xc0   :  { %1958 = vmatprep.subr.bf16.mxu0 %v4552_v26  ;;  %v4642_v26 = vld [vmem:[#allocation7 + $0x660] ss:$24 sps:$4 sm:$0xff]  }
  0xc2   :  { %2090 = vmatpush1.bf16.msra.mxu1 %v4466_v11  ;;  %v4616_v11 = vld [vmem:[#allocation7 + $0x5a0] ss:$24 sps:$4 sm:$0xff]  }
  0xc3   :  { %2091 = vmatprep.subr.bf16.mxu1 %v4474_v12  ;;  %1959 = vmatpush1.bf16.msra.mxu0 %v4550_v29  ;;  %v4624_v12 = vld [vmem:[#allocation7 + $0x5d4] ss:$24 sps:$4 sm:$0xff]   ;;  %v4589_v29 = vld [vmem:[#allocation7 + $0x788] ss:$24 sps:$4 sm:$0xff]  }
  0xc4   :  { %1960 = vmatprep.subr.bf16.mxu0 %v4558_v30  ;;  %v4597_v30 = vld [vmem:[#allocation7 + $0x7bc] ss:$24 sps:$4 sm:$0xff]  }
  0xc6   :  { %2092 = vmatpush1.bf16.msra.mxu1 %v4472_v15  ;;  %v4622_v15 = vld [vmem:[#allocation7 + $0x5d0] ss:$24 sps:$4 sm:$0xff]  }
  0xc7   :  { %2093 = vmatprep.subr.bf16.mxu1 %v4480_v16  ;;  %1961 = vmatpush1.bf16.msra.mxu0 %v4556_v33  ;;  %v4630_v16 = vld [vmem:[#allocation7 + $0x604] ss:$24 sps:$4 sm:$0xff]   ;;  %v4595_v33 = vld [vmem:[#allocation7 + $0x7b8] ss:$24 sps:$4 sm:$0xff]  }
  0xc8   :  { %1962 = vmatprep.subr.bf16.mxu0 %v4564_v34  ;;  %v4603_v34 = vld [vmem:[#allocation7 + $0x7ec] ss:$24 sps:$4 sm:$0xff]  }
  0xca   :  { %2094 = vmatpush1.bf16.msra.mxu1 %v4478_v19  ;;  %v4628_v19 = vld [vmem:[#allocation7 + $0x600] ss:$24 sps:$4 sm:$0xff]  }
  0xcb   :  { %2095 = vmatprep.subr.bf16.mxu1 %v4486_v20  ;;  %1963 = vmatpush1.bf16.msra.mxu0 %v4562_v37  ;;  %v4636_v20 = vld [vmem:[#allocation7 + $0x634] ss:$24 sps:$4 sm:$0xff]   ;;  %v4601_v37 = vld [vmem:[#allocation7 + $0x7e8] ss:$24 sps:$4 sm:$0xff]  }
  0xcc   :  { %1964 = vmatprep.subr.bf16.mxu0 %v4570_v38  ;;  %v4609_v38 = vld [vmem:[#allocation7 + $0x81c] ss:$24 sps:$4 sm:$0xff]  }
  0xce   :  { %2096 = vmatpush1.bf16.msra.mxu1 %v4484_v23  ;;  %v4634_v23 = vld [vmem:[#allocation7 + $0x630] ss:$24 sps:$4 sm:$0xff]  }
  0xcf   :  { %2097 = vmatprep.subr.bf16.mxu1 %v4492_v24  ;;  %1965 = vmatpush1.bf16.msra.mxu0 %v4568_v41  ;;  %v4644_v24 = vld [vmem:[#allocation7 + $0x664] ss:$24 sps:$4 sm:$0xff]   ;;  %v4607_v41 = vld [vmem:[#allocation7 + $0x818] ss:$24 sps:$4 sm:$0xff]  }
  0xd0   :  { %1966 = vmatprep.subr.bf16.mxu0 %v4576_v42  ;;  %v4615_v42 = vld [vmem:[#allocation7 + $0x84c] ss:$24 sps:$4 sm:$0xff]  }
  0xd2   :  { %2098 = vmatpush1.bf16.msra.mxu1 %v4490_v27  ;;  %v4591_v27 = vld [vmem:[#allocation7 + $0x78c] ss:$24 sps:$4 sm:$0xff]  }
  0xd3   :  { %2099 = vmatprep.subr.bf16.mxu1 %v4498_v28  ;;  %1967 = vmatpush1.bf16.msra.mxu0 %v4574_v45  ;;  %v4649_v28 = vld [vmem:[#allocation7 + $0x694] ss:$24 sps:$4 sm:$0xff]   ;;  %v4613_v45 = vld [vmem:[#allocation7 + $0x848] ss:$24 sps:$4 sm:$0xff]  }
  0xd4   :  { %1968 = vmatprep.subr.bf16.mxu0 %v4582_v46  ;;  %v4667_v46 = vld [vmem:[#allocation7 + $0x750] ss:$24 sps:$4 sm:$0xff]  }
  0xd6   :  { %2100 = vmatpush1.bf16.msra.mxu1 %v4496_v31  ;;  %v4647_v31 = vld [vmem:[#allocation7 + $0x690] ss:$24 sps:$4 sm:$0xff]  }
  0xd7   :  { %2101 = vmatprep.subr.bf16.mxu1 %v4504_v32  ;;  %1969 = vmatpush1.bf16.msra.mxu0 %v4580_v48  ;;  %v4654_v32 = vld [vmem:[#allocation7 + $0x6c4] ss:$24 sps:$4 sm:$0xff]  }
  0xd8   :  { %1970 = vmatprep.subr.bf16.mxu0 %v4588_v50  ;;  %v4674_v48 = vld [vmem:[#allocation7 + $0x784] ss:$24 sps:$4 sm:$0xff]  }
  0xd9   :  { %v4627_v50 = vld [vmem:[#allocation7 + $0x8ac] ss:$24 sps:$4 sm:$0xff]  }
  0xda   :  { %2102 = vmatpush1.bf16.msra.mxu1 %v4502_v35  ;;  %v4652_v35 = vld [vmem:[#allocation7 + $0x6c0] ss:$24 sps:$4 sm:$0xff]  }
  0xdb   :  { %2103 = vmatprep.subr.bf16.mxu1 %v4510_v36  ;;  %1971 = vmatpush1.bf16.msra.mxu0 %v4586_v53  ;;  %v4659_v36 = vld [vmem:[#allocation7 + $0x6f4] ss:$24 sps:$4 sm:$0xff]   ;;  %v4625_v53 = vld [vmem:[#allocation7 + $0x8a8] ss:$24 sps:$4 sm:$0xff]  }
  0xdc   :  { %1972 = vmatprep.subr.bf16.mxu0 %v4594_v54  ;;  %v4633_v54 = vld [vmem:[#allocation7 + $0x8dc] ss:$24 sps:$4 sm:$0xff]  }
  0xde   :  { %2104 = vmatpush1.bf16.msra.mxu1 %v4508_v39  ;;  %v4657_v39 = vld [vmem:[#allocation7 + $0x6f0] ss:$24 sps:$4 sm:$0xff]  }
  0xdf   :  { %2105 = vmatprep.subr.bf16.mxu1 %v4516_v40  ;;  %1973 = vmatpush1.bf16.msra.mxu0 %v4592_v57  ;;  %v4664_v40 = vld [vmem:[#allocation7 + $0x724] ss:$24 sps:$4 sm:$0xff]   ;;  %v4631_v57 = vld [vmem:[#allocation7 + $0x8d8] ss:$24 sps:$4 sm:$0xff]  }
  0xe0   :  { %1974 = vmatprep.subr.bf16.mxu0 %v4600_v58  ;;  %v4640_v58 = vld [vmem:[#allocation10 + $0x40] sm:$0xff]  }
  0xe2   :  { %2106 = vmatpush1.bf16.msra.mxu1 %v4514_v43  ;;  %v4662_v43 = vld [vmem:[#allocation7 + $0x720] ss:$24 sps:$4 sm:$0xff]  }
  0xe3   :  { %2107 = vmatprep.subr.bf16.mxu1 %v4522_v44  ;;  %1975 = vmatpush1.bf16.msra.mxu0 %v4598_v62  ;;  %v4669_v44 = vld [vmem:[#allocation7 + $0x754] ss:$24 sps:$4 sm:$0xff]  }
  0xe4   :  { %1976 = vmatprep.subr.bf16.mxu0 %v4606_v63  ;;  %v5232_v62 = vld [vmem:[#allocation2 + $0x10] ss:$24 sps:$4 sm:$0xff]   ;;  %v4641_v63 = vld [vmem:[#allocation10] sm:$0xff]  }
  0xe6   :  { %2108 = vmatpush1.bf16.msra.mxu1 %v4520_v47  ;;  %v4621_v47 = vld [vmem:[#allocation7 + $0x87c] ss:$24 sps:$4 sm:$0xff]  }
  0xe7   :  { %2109 = vmatprep.subr.bf16.mxu1 %v4528_v49  ;;  %1977 = vmatpush1.bf16.msra.mxu0 %v4604_v3  ;;  %v4619_v49 = vld [vmem:[#allocation7 + $0x878] ss:$24 sps:$4 sm:$0xff]   ;;  %v4694_v3 = vld [vmem:[#allocation7 + $0x844] ss:$24 sps:$4 sm:$0xff]  }
  0xe8   :  { %1978 = vmatprep.subr.bf16.mxu0 %v4612_v4  ;;  %v4646_v4 = vld [vmem:[#allocation10 + $0x8] sm:$0xff]  }
  0xea   :  { %2110 = vmatpush1.bf16.msra.mxu1 %v4526_v51  ;;  %v4672_v51 = vld [vmem:[#allocation7 + $0x780] ss:$24 sps:$4 sm:$0xff]  }
  0xeb   :  { %2111 = vmatprep.subr.bf16.mxu1 %v4534_v52  ;;  %1979 = vmatpush1.bf16.msra.mxu0 %v4610_v6  ;;  %v4679_v52 = vld [vmem:[#allocation7 + $0x7b4] ss:$24 sps:$4 sm:$0xff]  }
  0xec   :  { %1980 = vmatprep.subr.bf16.mxu0 %v4618_v8  ;;  %v4877_v6 = vld [vmem:[#allocation2 + $0x4] ss:$24 sps:$4 sm:$0xff]  }
  0xed   :  { %v4699_v8 = vld [vmem:[#allocation7 + $0x874] ss:$24 sps:$4 sm:$0xff]  }
  0xee   :  { %2112 = vmatpush1.bf16.msra.mxu1 %v4532_v55  ;;  %v4677_v55 = vld [vmem:[#allocation7 + $0x7b0] ss:$24 sps:$4 sm:$0xff]  }
  0xef   :  { %2124 = vmatprep.subr.bf16.mxu1 %v4542_v56  ;;  %1981 = vmatpush1.bf16.msra.mxu0 %v4616_v11  ;;  %v4684_v56 = vld [vmem:[#allocation7 + $0x7e4] ss:$24 sps:$4 sm:$0xff]   ;;  %v4697_v11 = vld [vmem:[#allocation7 + $0x870] ss:$24 sps:$4 sm:$0xff]  }
  0xf0   :  { %1982 = vmatprep.subr.bf16.mxu0 %v4624_v12  ;;  %v4704_v12 = vld [vmem:[#allocation7 + $0x8a4] ss:$24 sps:$4 sm:$0xff]  }
  0xf1   :  { %2114 = vmatmul.mubr.bf16.vlgmr.msra.gmra.mrb[0].mxu1 %v5224_v60 }
  0xf2   :  { %2125 = vmatpush1.bf16.msra.mxu1 %v4540_v59  ;;  %2156 = vmatprep.mubr.bf16.mxu1 %v5226_v1  ;;  %v4682_v59 = vld [vmem:[#allocation7 + $0x7e0] ss:$24 sps:$4 sm:$0xff]  }
  0xf3   :  { %2126 = vmatprep.subr.bf16.mxu1 %v4549_v61  ;;  %1983 = vmatpush1.bf16.msra.mxu0 %v4622_v15  ;;  %v4689_v61 = vld [vmem:[#allocation7 + $0x814] ss:$24 sps:$4 sm:$0xff]   ;;  %v4702_v15 = vld [vmem:[#allocation7 + $0x8a0] ss:$24 sps:$4 sm:$0xff]  }
  0xf4   :  { %1995 = vmatprep.subr.bf16.mxu0 %v4630_v16  ;;  %v4709_v16 = vld [vmem:[#allocation7 + $0x8d4] ss:$24 sps:$4 sm:$0xff]  }
  0xf6   :  { %2127 = vmatpush1.bf16.msra.mxu1 %v4547_v0  ;;  %1985 = vmatmul.mubr.bf16.vlgmr.msra.gmra.mrb[0].mxu0 %v5224_v60  ;;  %v4645_v0 = vld [vmem:[#allocation10 + $0x48] sm:$0xff]  }
  0xf7   :  { %2128 = vmatprep.subr.bf16.mxu1 %v4555_v2  ;;  %1996 = vmatpush1.bf16.msra.mxu0 %v4628_v19  ;;  %v4687_v2 = vld [vmem:[#allocation7 + $0x810] ss:$24 sps:$4 sm:$0xff]  }
  0xf8   :  { %1997 = vmatprep.subr.bf16.mxu0 %v4636_v20  ;;  %2027 = vmatprep.mubr.bf16.mxu0 %v5226_v1  ;;  %v4707_v19 = vld [vmem:[#allocation7 + $0x8d0] ss:$24 sps:$4 sm:$0xff]   ;;  %v4714_v20 = vld [vmem:[#allocation7 + $0x14] ss:$24 sps:$4 sm:$0xff]  }
  0xfa   :  { %2129 = vmatpush1.bf16.msra.mxu1 %v4553_v5  ;;  %v4650_v5 = vld [vmem:[#allocation10 + $0x50] sm:$0xff]  }
  0xfb   :  { %2130 = vmatprep.subr.bf16.mxu1 %v4561_v7  ;;  %1998 = vmatpush1.bf16.msra.mxu0 %v4634_v23  ;;  %v4692_v7 = vld [vmem:[#allocation7 + $0x840] ss:$24 sps:$4 sm:$0xff]   ;;  %v4712_v23 = vld [vmem:[#allocation7 + $0x10] ss:$24 sps:$4 sm:$0xff]  }
  0xfc   :  { %1999 = vmatprep.subr.bf16.mxu0 %v4644_v24  ;;  %v4719_v24 = vld [vmem:[#allocation7 + $0x44] ss:$24 sps:$4 sm:$0xff]  }
  0xfe   :  { %2131 = vmatpush1.bf16.msra.mxu1 %v4559_v9  ;;  %v4651_v9 = vld [vmem:[#allocation10 + $0x10] sm:$0xff]  }
  0xff   :  { %2132 = vmatprep.subr.bf16.mxu1 %v4567_v10  ;;  %2000 = vmatpush1.bf16.msra.mxu0 %v4642_v26  ;;  %v4655_v10 = vld [vmem:[#allocation10 + $0x58] sm:$0xff]  }
 0x100   :  { %2001 = vmatprep.subr.bf16.mxu0 %v4649_v28  ;;  %v4675_v26 = vld [vmem:[#allocation10 + $0x78] sm:$0xff]   ;;  %v4724_v28 = vld [vmem:[#allocation7 + $0x74] ss:$24 sps:$4 sm:$0xff]  }
 0x102   :  { %2133 = vmatpush1.bf16.msra.mxu1 %v4565_v13  ;;  %v4656_v13 = vld [vmem:[#allocation10 + $0x18] sm:$0xff]  }
 0x103   :  { %2134 = vmatprep.subr.bf16.mxu1 %v4573_v14  ;;  %2002 = vmatpush1.bf16.msra.mxu0 %v4647_v31  ;;  %v4660_v14 = vld [vmem:[#allocation10 + $0x60] sm:$0xff]  }
 0x104   :  { %2003 = vmatprep.subr.bf16.mxu0 %v4654_v32  ;;  %v4722_v31 = vld [vmem:[#allocation7 + $0x70] ss:$24 sps:$4 sm:$0xff]   ;;  %v4729_v32 = vld [vmem:[#allocation7 + $0xa4] ss:$24 sps:$4 sm:$0xff]  }
 0x106   :  { %2135 = vmatpush1.bf16.msra.mxu1 %v4571_v17  ;;  %v4661_v17 = vld [vmem:[#allocation10 + $0x20] sm:$0xff]  }
 0x107   :  { %2136 = vmatprep.subr.bf16.mxu1 %v4579_v18  ;;  %2004 = vmatpush1.bf16.msra.mxu0 %v4652_v35  ;;  %v4665_v18 = vld [vmem:[#allocation10 + $0x68] sm:$0xff]   ;;  %v4727_v35 = vld [vmem:[#allocation7 + $0xa0] ss:$24 sps:$4 sm:$0xff]  }
 0x108   :  { %2005 = vmatprep.subr.bf16.mxu0 %v4659_v36  ;;  %v4734_v36 = vld [vmem:[#allocation7 + $0xd4] ss:$24 sps:$4 sm:$0xff]  }
 0x10a   :  { %2137 = vmatpush1.bf16.msra.mxu1 %v4577_v21  ;;  %v4666_v21 = vld [vmem:[#allocation10 + $0x28] sm:$0xff]  }
 0x10b   :  { %2138 = vmatprep.subr.bf16.mxu1 %v4585_v22  ;;  %2006 = vmatpush1.bf16.msra.mxu0 %v4657_v39  ;;  %v4670_v22 = vld [vmem:[#allocation10 + $0x70] sm:$0xff]  }
 0x10c   :  { %2007 = vmatprep.subr.bf16.mxu0 %v4664_v40  ;;  %v4690_v39 = vld [vmem:[#allocation10 + $0xd0] sm:$0xff]  }
 0x10d   :  { %v5239_v40 = vld [vmem:[#allocation2 + $0xc] ss:$24 sps:$4 sm:$0xff]  }
 0x10e   :  { %2139 = vmatpush1.bf16.msra.mxu1 %v4583_v25  ;;  %v4671_v25 = vld [vmem:[#allocation10 + $0x30] sm:$0xff]  }
 0x10f   :  { %2140 = vmatprep.subr.bf16.mxu1 %v4591_v27  ;;  %2008 = vmatpush1.bf16.msra.mxu0 %v4662_v43  ;;  %v4717_v27 = vld [vmem:[#allocation7 + $0x40] ss:$24 sps:$4 sm:$0xff]   ;;  %v4739_v43 = vld [vmem:[#allocation7 + $0x104] ss:$24 sps:$4 sm:$0xff]  }
 0x110   :  { %2009 = vmatprep.subr.bf16.mxu0 %v4669_v44  ;;  %v4695_v44 = vld [vmem:[#allocation10 + $0xd8] sm:$0xff]  }
 0x112   :  { %2141 = vmatpush1.bf16.msra.mxu1 %v4589_v29  ;;  %v4676_v29 = vld [vmem:[#allocation10 + $0x38] sm:$0xff]  }
 0x113   :  { %2142 = vmatprep.subr.bf16.mxu1 %v4597_v30  ;;  %2010 = vmatpush1.bf16.msra.mxu0 %v4667_v46  ;;  %v4680_v30 = vld [vmem:[#allocation10 + $0xc0] sm:$0xff]  }
 0x114   :  { %2011 = vmatprep.subr.bf16.mxu0 %v4674_v48  ;;  %v4744_v46 = vld [vmem:[#allocation7 + $0x134] ss:$24 sps:$4 sm:$0xff]  }
 0x115   :  { %v4700_v48 = vld [vmem:[#allocation10 + $0xe0] sm:$0xff]  }
 0x116   :  { %2143 = vmatpush1.bf16.msra.mxu1 %v4595_v33  ;;  %v4681_v33 = vld [vmem:[#allocation10 + $0x80] sm:$0xff]  }
 0x117   :  { %2144 = vmatprep.subr.bf16.mxu1 %v4603_v34  ;;  %2012 = vmatpush1.bf16.msra.mxu0 %v4672_v51  ;;  %v4685_v34 = vld [vmem:[#allocation10 + $0xc8] sm:$0xff]   ;;  %v4701_v51 = vld [vmem:[#allocation10 + $0xa0] sm:$0xff]  }
 0x118   :  { %2013 = vmatprep.subr.bf16.mxu0 %v4679_v52  ;;  %v4705_v52 = vld [vmem:[#allocation10 + $0xe8] sm:$0xff]  }
 0x11a   :  { %2145 = vmatpush1.bf16.msra.mxu1 %v4601_v37  ;;  %v5236_v37 = vld [vmem:[#allocation2] ss:$24 sps:$4 sm:$0xff]  }
 0x11b   :  { %2146 = vmatprep.subr.bf16.mxu1 %v4609_v38  ;;  %2014 = vmatpush1.bf16.msra.mxu0 %v4677_v55  ;;  %v4686_v38 = vld [vmem:[#allocation10 + $0x88] sm:$0xff]  }
 0x11c   :  { %2015 = vmatprep.subr.bf16.mxu0 %v4684_v56  ;;  %v4706_v55 = vld [vmem:[#allocation10 + $0xa8] sm:$0xff]   ;;  %v4710_v56 = vld [vmem:[#allocation10 + $0xf0] sm:$0xff]  }
 0x11e   :  { %2147 = vmatpush1.bf16.msra.mxu1 %v4607_v41  ;;  %v4732_v41 = vld [vmem:[#allocation7 + $0xd0] ss:$24 sps:$4 sm:$0xff]  }
 0x11f   :  { %2148 = vmatprep.subr.bf16.mxu1 %v4615_v42  ;;  %2016 = vmatpush1.bf16.msra.mxu0 %v4682_v59  ;;  %v4691_v42 = vld [vmem:[#allocation10 + $0x90] sm:$0xff]  }
 0x120   :  { %2017 = vmatprep.subr.bf16.mxu0 %v4689_v61  ;;  %v4711_v59 = vld [vmem:[#allocation10 + $0xb0] sm:$0xff]   ;;  %v4715_v61 = vld [vmem:[#allocation10 + $0xf8] sm:$0xff]  }
 0x122   :  { %2149 = vmatpush1.bf16.msra.mxu1 %v4613_v45  ;;  %v4737_v45 = vld [vmem:[#allocation7 + $0x100] ss:$24 sps:$4 sm:$0xff]  }
 0x123   :  { %2150 = vmatprep.subr.bf16.mxu1 %v4621_v47  ;;  %2018 = vmatpush1.bf16.msra.mxu0 %v4687_v2  ;;  %v4696_v47 = vld [vmem:[#allocation10 + $0x98] sm:$0xff]  }
 0x124   :  { %2019 = vmatprep.subr.bf16.mxu0 %v4694_v3  ;;  %v4716_v2 = vld [vmem:[#allocation10 + $0xb8] sm:$0xff]   ;;  %v4720_v3 = vld [vmem:[#allocation10 + $0x140] sm:$0xff]  }
 0x126   :  { %2151 = vmatpush1.bf16.msra.mxu1 %v4619_v49  ;;  %v4742_v49 = vld [vmem:[#allocation7 + $0x130] ss:$24 sps:$4 sm:$0xff]  }
 0x127   :  { %2152 = vmatprep.subr.bf16.mxu1 %v4627_v50  ;;  %2020 = vmatpush1.bf16.msra.mxu0 %v4692_v7  ;;  %v4749_v50 = vld [vmem:[#allocation7 + $0x164] ss:$24 sps:$4 sm:$0xff]   ;;  %v4725_v7 = vld [vmem:[#allocation10 + $0x148] sm:$0xff]  }
 0x128   :  { %2021 = vmatprep.subr.bf16.mxu0 %v4699_v8  ;;  %v4763_v8 = vld [vmem:[#allocation7 + $0x220] ss:$24 sps:$4 sm:$0xff]  }
 0x12a   :  { %2153 = vmatpush1.bf16.msra.mxu1 %v4625_v53  ;;  %v4747_v53 = vld [vmem:[#allocation7 + $0x160] ss:$24 sps:$4 sm:$0xff]  }
 0x12b   :  { %2154 = vmatprep.subr.bf16.mxu1 %v4633_v54  ;;  %2022 = vmatpush1.bf16.msra.mxu0 %v4697_v11  ;;  %v4754_v54 = vld [vmem:[#allocation7 + $0x194] ss:$24 sps:$4 sm:$0xff]  }
 0x12c   :  { %2023 = vmatprep.subr.bf16.mxu0 %v4704_v12  ;;  %v4730_v11 = vld [vmem:[#allocation10 + $0x150] sm:$0xff]   ;;  %v4766_v12 = vld [vmem:[#allocation7 + $0x250] ss:$24 sps:$4 sm:$0xff]  }
 0x12e   :  { %2155 = vmatpush1.bf16.msra.mxu1 %v4631_v57  ;;  %v4752_v57 = vld [vmem:[#allocation7 + $0x190] ss:$24 sps:$4 sm:$0xff]  }
 0x12f   :  { %4243 = vmatprep.subr.bf16.mxu1 %v4640_v58  ;;  %2024 = vmatpush1.bf16.msra.mxu0 %v4702_v15  ;;  %v4759_v58 = vld [vmem:[#allocation7 + $0x1c4] ss:$24 sps:$4 sm:$0xff]  }
 0x130   :  { %2025 = vmatprep.subr.bf16.mxu0 %v4709_v16  ;;  %v4735_v15 = vld [vmem:[#allocation10 + $0x158] sm:$0xff]  }
 0x131   :  { %2157 = vmatmul.mubr.bf16.vlgmr.msra.gmra.mrb[0].mxu1 %v5232_v62  ;;  %v4769_v16 = vld [vmem:[#allocation7 + $0x280] ss:$24 sps:$4 sm:$0xff]  }
 0x132   :  { %4244 = vmatpush3.bf16.msra.mxu1 %v4641_v63  ;;  %2761 = vmatprep.mubr.bf16.mxu1 %v4877_v6  ;;  %v4757_v63 = vld [vmem:[#allocation7 + $0x1c0] ss:$24 sps:$4 sm:$0xff]  }
 0x133   :  { %4245 = vmatprep.subr.bf16.mxu1 %v4645_v0  ;;  %2026 = vmatpush1.bf16.msra.mxu0 %v4707_v19  ;;  %v4762_v0 = vld [vmem:[#allocation7 + $0x1f4] ss:$24 sps:$4 sm:$0xff]   ;;  %v4777_v19 = vld [vmem:[#allocation7 + $0x2e4] ss:$24 sps:$4 sm:$0xff]  }
 0x134   :  { %2167 = vmatprep.subr.bf16.mxu0 %v4714_v20  ;;  %v4741_v20 = vld [vmem:[#allocation10 + $0x120] sm:$0xff]  }
 0x136   :  { %4246 = vmatpush3.bf16.msra.mxu1 %v4646_v4  ;;  %2028 = vmatmul.mubr.bf16.vlgmr.msra.gmra.mrb[0].mxu0 %v5232_v62  ;;  %v4760_v4 = vld [vmem:[#allocation7 + $0x1f0] ss:$24 sps:$4 sm:$0xff]  }
 0x137   :  { %4247 = vmatprep.subr.bf16.mxu1 %v4650_v5  ;;  %2168 = vmatpush1.bf16.msra.mxu0 %v4712_v23  ;;  %v4765_v5 = vld [vmem:[#allocation7 + $0x224] ss:$24 sps:$4 sm:$0xff]   ;;  %v4780_v23 = vld [vmem:[#allocation7 + $0x314] ss:$24 sps:$4 sm:$0xff]  }
 0x138   :  { %2169 = vmatprep.subr.bf16.mxu0 %v4719_v24  ;;  %2199 = vmatprep.mubr.bf16.mxu0 %v4877_v6  ;;  %v4721_v6 = vld [vmem:[#allocation10 + $0x100] sm:$0xff]   ;;  %v4746_v24 = vld [vmem:[#allocation10 + $0x128] sm:$0xff]  }
 0x13a   :  { %4248 = vmatpush3.bf16.msra.mxu1 %v4651_v9  ;;  %v4768_v9 = vld [vmem:[#allocation7 + $0x254] ss:$24 sps:$4 sm:$0xff]  }
 0x13b   :  { %4249 = vmatprep.subr.bf16.mxu1 %v4655_v10  ;;  %2170 = vmatpush1.bf16.msra.mxu0 %v4717_v27  ;;  %v4726_v10 = vld [vmem:[#allocation10 + $0x108] sm:$0xff]   ;;  %v4783_v27 = vld [vmem:[#allocation7 + $0x344] ss:$24 sps:$4 sm:$0xff]  }
 0x13c   :  { %2171 = vmatprep.subr.bf16.mxu0 %v4724_v28  ;;  %v4751_v28 = vld [vmem:[#allocation10 + $0x130] sm:$0xff]  }
 0x13e   :  { %4250 = vmatpush3.bf16.msra.mxu1 %v4656_v13  ;;  %v4771_v13 = vld [vmem:[#allocation7 + $0x284] ss:$24 sps:$4 sm:$0xff]  }
 0x13f   :  { %4251 = vmatprep.subr.bf16.mxu1 %v4660_v14  ;;  %2172 = vmatpush1.bf16.msra.mxu0 %v4722_v31  ;;  %v4731_v14 = vld [vmem:[#allocation10 + $0x110] sm:$0xff]  }
 0x140   :  { %2173 = vmatprep.subr.bf16.mxu0 %v4729_v32  ;;  %v4786_v31 = vld [vmem:[#allocation7 + $0x374] ss:$24 sps:$4 sm:$0xff]   ;;  %v4756_v32 = vld [vmem:[#allocation10 + $0x138] sm:$0xff]  }
 0x142   :  { %4252 = vmatpush3.bf16.msra.mxu1 %v4661_v17  ;;  %v4774_v17 = vld [vmem:[#allocation7 + $0x2b4] ss:$24 sps:$4 sm:$0xff]  }
 0x143   :  { %4253 = vmatprep.subr.bf16.mxu1 %v4665_v18  ;;  %2174 = vmatpush1.bf16.msra.mxu0 %v4727_v35  ;;  %v4740_v18 = vld [vmem:[#allocation10 + $0x160] sm:$0xff]   ;;  %v4787_v35 = vld [vmem:[#allocation7 + $0x3a0] ss:$24 sps:$4 sm:$0xff]  }
 0x144   :  { %2175 = vmatprep.subr.bf16.mxu0 %v4734_v36  ;;  %v4792_v36 = vld [vmem:[#allocation7 + $0x3d4] ss:$24 sps:$4 sm:$0xff]  }
 0x146   :  { %4254 = vmatpush3.bf16.msra.mxu1 %v4666_v21  ;;  %v4745_v21 = vld [vmem:[#allocation10 + $0x168] sm:$0xff]  }
 0x147   :  { %4255 = vmatprep.subr.bf16.mxu1 %v4670_v22  ;;  %2176 = vmatpush1.bf16.msra.mxu0 %v4732_v41  ;;  %v4775_v22 = vld [vmem:[#allocation7 + $0x2e0] ss:$24 sps:$4 sm:$0xff]   ;;  %v4796_v41 = vld [vmem:[#allocation7 + $0x430] ss:$24 sps:$4 sm:$0xff]  }
 0x148   :  { %2177 = vmatprep.subr.bf16.mxu0 %v4739_v43  ;;  %v4799_v43 = vld [vmem:[#allocation7 + $0x460] ss:$24 sps:$4 sm:$0xff]  }
 0x14a   :  { %4256 = vmatpush3.bf16.msra.mxu1 %v4671_v25  ;;  %v4750_v25 = vld [vmem:[#allocation10 + $0x170] sm:$0xff]  }
 0x14b   :  { %4257 = vmatprep.subr.bf16.mxu1 %v4675_v26  ;;  %2178 = vmatpush1.bf16.msra.mxu0 %v4737_v45  ;;  %v4778_v26 = vld [vmem:[#allocation7 + $0x310] ss:$24 sps:$4 sm:$0xff]  }
 0x14c   :  { %2179 = vmatprep.subr.bf16.mxu0 %v4744_v46  ;;  %v4802_v45 = vld [vmem:[#allocation7 + $0x490] ss:$24 sps:$4 sm:$0xff]   ;;  %v4807_v46 = vld [vmem:[#allocation7 + $0x4c4] ss:$24 sps:$4 sm:$0xff]  }
 0x14e   :  { %4258 = vmatpush3.bf16.msra.mxu1 %v4676_v29  ;;  %v4755_v29 = vld [vmem:[#allocation10 + $0x178] sm:$0xff]  }
 0x14f   :  { %4265 = vmatprep.subr.bf16.mxu1 %v4680_v30  ;;  %2180 = vmatpush1.bf16.msra.mxu0 %v4742_v49  ;;  %v4781_v30 = vld [vmem:[#allocation7 + $0x340] ss:$24 sps:$4 sm:$0xff]   ;;  %v4808_v49 = vld [vmem:[#allocation7 + $0x4f0] ss:$24 sps:$4 sm:$0xff]  }
 0x150   :  { %2181 = vmatprep.subr.bf16.mxu0 %v4749_v50  ;;  %v4813_v50 = vld [vmem:[#allocation7 + $0x524] ss:$24 sps:$4 sm:$0xff]  }
 0x151   :  { %2762 = vmatmul.mubr.bf16.vlgmr.msra.gmra.mrb[4].mxu1 %v5236_v37 }
 0x152   :  { %4266 = vmatpush3.bf16.msra.mxu1 %v4681_v33  ;;  %2802 = vmatprep.mubr.bf16.mxu1 %v5239_v40  ;;  %v4784_v33 = vld [vmem:[#allocation7 + $0x370] ss:$24 sps:$4 sm:$0xff]  }
 0x153   :  { %4267 = vmatprep.subr.bf16.mxu1 %v4685_v34  ;;  %2182 = vmatpush1.bf16.msra.mxu0 %v4747_v53  ;;  %v4789_v34 = vld [vmem:[#allocation7 + $0x3a4] ss:$24 sps:$4 sm:$0xff]   ;;  %v4814_v53 = vld [vmem:[#allocation7 + $0x550] ss:$24 sps:$4 sm:$0xff]  }
 0x154   :  { %2183 = vmatprep.subr.bf16.mxu0 %v4754_v54  ;;  %v4819_v54 = vld [vmem:[#allocation7 + $0x584] ss:$24 sps:$4 sm:$0xff]  }
 0x156   :  { %4268 = vmatpush3.bf16.msra.mxu1 %v4686_v38  ;;  %v4795_v38 = vld [vmem:[#allocation7 + $0x404] ss:$24 sps:$4 sm:$0xff]  }
 0x157   :  { %4269 = vmatprep.subr.bf16.mxu1 %v4690_v39  ;;  %2184 = vmatpush1.bf16.msra.mxu0 %v4752_v57  ;;  %v4793_v39 = vld [vmem:[#allocation7 + $0x400] ss:$24 sps:$4 sm:$0xff]   ;;  %v4820_v57 = vld [vmem:[#allocation7 + $0x5b0] ss:$24 sps:$4 sm:$0xff]  }
 0x158   :  { %2185 = vmatprep.subr.bf16.mxu0 %v4759_v58  ;;  %v4825_v58 = vld [vmem:[#allocation7 + $0x5e4] ss:$24 sps:$4 sm:$0xff]  }
 0x15a   :  { %4270 = vmatpush3.bf16.msra.mxu1 %v4691_v42  ;;  %v4801_v42 = vld [vmem:[#allocation7 + $0x464] ss:$24 sps:$4 sm:$0xff]  }
 0x15b   :  { %4271 = vmatprep.subr.bf16.mxu1 %v4695_v44  ;;  %2186 = vmatpush1.bf16.msra.mxu0 %v4757_v63  ;;  %v4804_v44 = vld [vmem:[#allocation7 + $0x494] ss:$24 sps:$4 sm:$0xff]   ;;  %v4826_v63 = vld [vmem:[#allocation7 + $0x610] ss:$24 sps:$4 sm:$0xff]  }
 0x15c   :  { %2187 = vmatprep.subr.bf16.mxu0 %v4762_v0  ;;  %v4831_v0 = vld [vmem:[#allocation7 + $0x644] ss:$24 sps:$4 sm:$0xff]  }
 0x15e   :  { %4272 = vmatpush3.bf16.msra.mxu1 %v4696_v47  ;;  %v4805_v47 = vld [vmem:[#allocation7 + $0x4c0] ss:$24 sps:$4 sm:$0xff]  }
 0x15f   :  { %4273 = vmatprep.subr.bf16.mxu1 %v4700_v48  ;;  %2188 = vmatpush1.bf16.msra.mxu0 %v4760_v4  ;;  %v4810_v48 = vld [vmem:[#allocation7 + $0x4f4] ss:$24 sps:$4 sm:$0xff]   ;;  %v4881_v4 = vld [vmem:[#allocation2 + $0x14] ss:$24 sps:$4 sm:$0xff]  }
 0x160   :  { %2189 = vmatprep.subr.bf16.mxu0 %v4765_v5  ;;  %v4834_v5 = vld [vmem:[#allocation7 + $0x674] ss:$24 sps:$4 sm:$0xff]  }
 0x162   :  { %4274 = vmatpush3.bf16.msra.mxu1 %v4701_v51  ;;  %v4811_v51 = vld [vmem:[#allocation7 + $0x520] ss:$24 sps:$4 sm:$0xff]  }
 0x163   :  { %4275 = vmatprep.subr.bf16.mxu1 %v4705_v52  ;;  %2190 = vmatpush1.bf16.msra.mxu0 %v4763_v8  ;;  %v4816_v52 = vld [vmem:[#allocation7 + $0x554] ss:$24 sps:$4 sm:$0xff]   ;;  %v4835_v8 = vld [vmem:[#allocation7 + $0x6a0] ss:$24 sps:$4 sm:$0xff]  }
 0x164   :  { %2191 = vmatprep.subr.bf16.mxu0 %v4768_v9  ;;  %v4840_v9 = vld [vmem:[#allocation7 + $0x6d4] ss:$24 sps:$4 sm:$0xff]  }
 0x166   :  { %4276 = vmatpush3.bf16.msra.mxu1 %v4706_v55  ;;  %v4817_v55 = vld [vmem:[#allocation7 + $0x580] ss:$24 sps:$4 sm:$0xff]  }
 0x167   :  { %4277 = vmatprep.subr.bf16.mxu1 %v4710_v56  ;;  %2192 = vmatpush1.bf16.msra.mxu0 %v4766_v12  ;;  %v4822_v56 = vld [vmem:[#allocation7 + $0x5b4] ss:$24 sps:$4 sm:$0xff]   ;;  %v4841_v12 = vld [vmem:[#allocation7 + $0x700] ss:$24 sps:$4 sm:$0xff]  }
 0x168   :  { %2193 = vmatprep.subr.bf16.mxu0 %v4771_v13  ;;  %v4846_v13 = vld [vmem:[#allocation7 + $0x734] ss:$24 sps:$4 sm:$0xff]  }
 0x16a   :  { %4278 = vmatpush3.bf16.msra.mxu1 %v4711_v59  ;;  %v4823_v59 = vld [vmem:[#allocation7 + $0x5e0] ss:$24 sps:$4 sm:$0xff]  }
 0x16b   :  { %4279 = vmatprep.subr.bf16.mxu1 %v4715_v61  ;;  %2194 = vmatpush1.bf16.msra.mxu0 %v4769_v16  ;;  %v4828_v61 = vld [vmem:[#allocation7 + $0x614] ss:$24 sps:$4 sm:$0xff]   ;;  %v4847_v16 = vld [vmem:[#allocation7 + $0x760] ss:$24 sps:$4 sm:$0xff]  }
 0x16c   :  { %2195 = vmatprep.subr.bf16.mxu0 %v4774_v17  ;;  %v4852_v17 = vld [vmem:[#allocation7 + $0x794] ss:$24 sps:$4 sm:$0xff]  }
 0x16e   :  { %4280 = vmatpush3.bf16.msra.mxu1 %v4716_v2  ;;  %v4880_v2 = vld [vmem:[#allocation2 + $0x8] ss:$24 sps:$4 sm:$0xff]  }
 0x16f   :  { %4287 = vmatprep.subr.bf16.mxu1 %v4720_v3  ;;  %v4829_v3 = vld [vmem:[#allocation7 + $0x640] ss:$24 sps:$4 sm:$0xff]  }
 0x171   :  { %2803 = vmatmul.mubr.bf16.vlgmr.msra.gmra.mrb[8].mxu1 %v5224_v60  ;;  %v4736_v60 = vld [vmem:[#allocation10 + $0x118] sm:$0xff]  }
 0x172   :  { %4288 = vmatpush3.bf16.msra.mxu1 %v4721_v6  ;;  %2843 = vmatprep.mubr.bf16.mxu1 %v5226_v1  ;;  %v4772_v1 = vld [vmem:[#allocation7 + $0x2b0] ss:$24 sps:$4 sm:$0xff]  }
 0x173   :  { %4289 = vmatprep.subr.bf16.mxu1 %v4725_v7  ;;  %2196 = vmatpush1.bf16.msra.mxu0 %v4772_v1  ;;  %v4832_v6 = vld [vmem:[#allocation7 + $0x670] ss:$24 sps:$4 sm:$0xff]   ;;  %v4837_v7 = vld [vmem:[#allocation7 + $0x6a4] ss:$24 sps:$4 sm:$0xff]   ;;  %v4853_v1 = vld [vmem:[#allocation7 + $0x7c0] ss:$24 sps:$4 sm:$0xff]  }
 0x174   :  { %2197 = vmatprep.subr.bf16.mxu0 %v4777_v19  ;;  %v4858_v19 = vld [vmem:[#allocation7 + $0x7f4] ss:$24 sps:$4 sm:$0xff]  }
 0x176   :  { %4290 = vmatpush3.bf16.msra.mxu1 %v4726_v10  ;;  %v4838_v10 = vld [vmem:[#allocation7 + $0x6d0] ss:$24 sps:$4 sm:$0xff]  }
 0x177   :  { %4291 = vmatprep.subr.bf16.mxu1 %v4730_v11  ;;  %2198 = vmatpush1.bf16.msra.mxu0 %v4775_v22  ;;  %v4843_v11 = vld [vmem:[#allocation7 + $0x704] ss:$24 sps:$4 sm:$0xff]  }
 0x178   :  { %2210 = vmatprep.subr.bf16.mxu0 %v4780_v23  ;;  %v4861_v22 = vld [vmem:[#allocation7 + $0x824] ss:$24 sps:$4 sm:$0xff]   ;;  %v4859_v23 = vld [vmem:[#allocation7 + $0x820] ss:$24 sps:$4 sm:$0xff]  }
 0x17a   :  { %4292 = vmatpush3.bf16.msra.mxu1 %v4731_v14  ;;  %2200 = vmatmul.mubr.bf16.vlgmr.msra.gmra.mrb[4].mxu0 %v5236_v37  ;;  %v4790_v37 = vld [vmem:[#allocation7 + $0x3d0] ss:$24 sps:$4 sm:$0xff]  }
 0x17b   :  { %4293 = vmatprep.subr.bf16.mxu1 %v4735_v15  ;;  %2211 = vmatpush1.bf16.msra.mxu0 %v4778_v26  ;;  %v4844_v14 = vld [vmem:[#allocation7 + $0x730] ss:$24 sps:$4 sm:$0xff]   ;;  %v4849_v15 = vld [vmem:[#allocation7 + $0x764] ss:$24 sps:$4 sm:$0xff]  }
 0x17c   :  { %2212 = vmatprep.subr.bf16.mxu0 %v4783_v27  ;;  %2242 = vmatprep.mubr.bf16.mxu0 %v5239_v40  ;;  %v4798_v40 = vld [vmem:[#allocation7 + $0x434] ss:$24 sps:$4 sm:$0xff]   ;;  %v4867_v26 = vld [vmem:[#allocation7 + $0x884] ss:$24 sps:$4 sm:$0xff]   ;;  %v409_v27 = vlaneseq }
 0x17e   :  { %4294 = vmatpush3.bf16.msra.mxu1 %v4736_v60  ;;  %v4850_v60 = vld [vmem:[#allocation7 + $0x790] ss:$24 sps:$4 sm:$0xff]  }
 0x17f   :  { %4295 = vmatprep.subr.bf16.mxu1 %v4740_v18  ;;  %2213 = vmatpush1.bf16.msra.mxu0 %v4781_v30  ;;  %v4855_v18 = vld [vmem:[#allocation7 + $0x7c4] ss:$24 sps:$4 sm:$0xff]   ;;  %v5249_v30 = vshrl.u32 %v409_v27, 7 }
 0x180   :  { %2214 = vmatprep.subr.bf16.mxu0 %v4786_v31  ;;  %v4868_v31 = vld [vmem:[#allocation7 + $0x8b0] ss:$24 sps:$4 sm:$0xff]  }
 0x182   :  { %4296 = vmatpush3.bf16.msra.mxu1 %v4741_v20  ;;  %v4856_v20 = vld [vmem:[#allocation7 + $0x7f0] ss:$24 sps:$4 sm:$0xff]  }
 0x183   :  { %4297 = vmatprep.subr.bf16.mxu1 %v4745_v21  ;;  %2215 = vmatpush1.bf16.msra.mxu0 %v4784_v33  ;;  %v5082_v21 = vmov 1   ;;  %v419_v33 = vsub.s32 2, %v5249_v30 }
 0x184   :  { %2216 = vmatprep.subr.bf16.mxu0 %v4789_v34  ;;  %4381 = vset.pattern.permute.xlu1 %v5082_v21  ;;  %v5252_v34 = vld [vmem:[#allocation8] sm:$0x3f] }
 0x186   :  { %4298 = vmatpush3.bf16.msra.mxu1 %v4746_v24  ;;  %v4864_v24 = vld [vmem:[#allocation7 + $0x854] ss:$24 sps:$4 sm:$0xff]  }
 0x187   :  { %4299 = vmatprep.subr.bf16.mxu1 %v4750_v25  ;;  %2217 = vmatpush1.bf16.msra.mxu0 %v4787_v35  ;;  %v4862_v25 = vld [vmem:[#allocation7 + $0x850] ss:$24 sps:$4 sm:$0xff]   ;;  %v423_v35 = vsub.s32 3, %v5249_v30 }
 0x188   :  { %2218 = vmatprep.subr.bf16.mxu0 %v4792_v36  ;;  %v4871_v36 = vld [vmem:[#allocation7 + $0x8e0] ss:$24 sps:$4 sm:$0xff]  }
 0x18a   :  { %4300 = vmatpush3.bf16.msra.mxu1 %v4751_v28  ;;  %v4865_v28 = vld [vmem:[#allocation7 + $0x880] ss:$24 sps:$4 sm:$0xff]  }
 0x18b   :  { %4301 = vmatprep.subr.bf16.mxu1 %v4755_v29  ;;  %2219 = vmatpush1.bf16.msra.mxu0 %v4790_v37  ;;  %v4870_v29 = vld [vmem:[#allocation7 + $0x8b4] ss:$24 sps:$4 sm:$0xff]   ;;  %v420_v37 = vrot.slane %v5252_v34, %v419_v33 }
 0x18c   :  { %2220 = vmatprep.subr.bf16.mxu0 %v4795_v38  ;;  %v424_v38 = vrot.slane %v5252_v34, %v423_v35  ;;  %v2853_v33 = vld [vmem:[%s5558_s1 + $0x8] sm:$0xff] }
 0x18d   :  { %vm2857_vm0 = vcmp.gt.f32.partialorder %v2853_v33, 0.0 }
 0x18e   :  { %4302 = vmatpush3.bf16.msra.mxu1 %v4756_v32  ;;  %v4873_v32 = vld [vmem:[#allocation7 + $0x8e4] ss:$24 sps:$4 sm:$0xff]  }
 0x18f   :  { %2221 = vmatpush1.bf16.msra.mxu0 %v4793_v39 }
 0x190   :  { %2222 = vmatprep.subr.bf16.mxu0 %v4798_v40 }
 0x191   :  { %2844 = vmatmul.mubr.bf16.vlgmr.msra.gmra.mrb[12].mxu1 %v5232_v62 }
 0x193   :  { %2223 = vmatpush1.bf16.msra.mxu0 %v4796_v41 }
 0x194   :  { %2224 = vmatprep.subr.bf16.mxu0 %v4801_v42 }
 0x197   :  { %2225 = vmatpush1.bf16.msra.mxu0 %v4799_v43 }
 0x198   :  { %2226 = vmatprep.subr.bf16.mxu0 %v4804_v44 }
 0x19b   :  { %2227 = vmatpush1.bf16.msra.mxu0 %v4802_v45 }
 0x19c   :  { %2228 = vmatprep.subr.bf16.mxu0 %v4807_v46 }
 0x19f   :  { %2229 = vmatpush1.bf16.msra.mxu0 %v4805_v47 }
 0x1a0   :  { %2230 = vmatprep.subr.bf16.mxu0 %v4810_v48 }
 0x1a3   :  { %2231 = vmatpush1.bf16.msra.mxu0 %v4808_v49  ;;  %v5271_v49 = vsub.s32 0, %v5249_v30 }
 0x1a4   :  { %2232 = vmatprep.subr.bf16.mxu0 %v4813_v50  ;;  %v415_v50 = vsub.s32 1, %v5249_v30 }
 0x1a7   :  { %2233 = vmatpush1.bf16.msra.mxu0 %v4811_v51  ;;  %v416_v51 = vrot.slane %v5252_v34, %v415_v50 }
 0x1a8   :  { %2234 = vmatprep.subr.bf16.mxu0 %v4816_v52 }
 0x1ab   :  { %2235 = vmatpush1.bf16.msra.mxu0 %v4814_v53 }
 0x1ac   :  { %2236 = vmatprep.subr.bf16.mxu0 %v4819_v54 }
 0x1af   :  { %2237 = vmatpush1.bf16.msra.mxu0 %v4817_v55 }
 0x1b0   :  { %2238 = vmatprep.subr.bf16.mxu0 %v4822_v56 }
 0x1b3   :  { %2239 = vmatpush1.bf16.msra.mxu0 %v4820_v57 }
 0x1b4   :  { %2240 = vmatprep.subr.bf16.mxu0 %v4825_v58 }
 0x1b7   :  { %2241 = vmatpush1.bf16.msra.mxu0 %v4823_v59 }
 0x1b8   :  { %2253 = vmatprep.subr.bf16.mxu0 %v4828_v61 }
 0x1ba   :  { %2243 = vmatmul.mubr.bf16.vlgmr.msra.gmra.mrb[4].mxu0 %v4880_v2 }
 0x1bb   :  { %2254 = vmatpush1.bf16.msra.mxu0 %v4826_v63  ;;  %2285 = vmatprep.mubr.bf16.mxu0 %v4881_v4 }
 0x1bc   :  { %2255 = vmatprep.subr.bf16.mxu0 %v4831_v0 }
 0x1bf   :  { %2256 = vmatpush1.bf16.msra.mxu0 %v4829_v3 }
 0x1c0   :  { %2257 = vmatprep.subr.bf16.mxu0 %v4834_v5 }
 0x1c3   :  { %2258 = vmatpush1.bf16.msra.mxu0 %v4832_v6 }
 0x1c4   :  { %2259 = vmatprep.subr.bf16.mxu0 %v4837_v7  ;;  %v4097_v7 = vld [vmem:[#allocation11] ss:$0 sm:$0xff] }
 0x1c7   :  { %2260 = vmatpush1.bf16.msra.mxu0 %v4835_v8 }
 0x1c8   :  { %2261 = vmatprep.subr.bf16.mxu0 %v4840_v9 }
 0x1cb   :  { %2262 = vmatpush1.bf16.msra.mxu0 %v4838_v10 }
 0x1cc   :  { %2263 = vmatprep.subr.bf16.mxu0 %v4843_v11 }
 0x1cf   :  { %2264 = vmatpush1.bf16.msra.mxu0 %v4841_v12 }
 0x1d0   :  { %2265 = vmatprep.subr.bf16.mxu0 %v4846_v13 }
 0x1d3   :  { %2266 = vmatpush1.bf16.msra.mxu0 %v4844_v14 }
 0x1d4   :  { %2267 = vmatprep.subr.bf16.mxu0 %v4849_v15 }
 0x1d7   :  { %2268 = vmatpush1.bf16.msra.mxu0 %v4847_v16 }
 0x1d8   :  { %2269 = vmatprep.subr.bf16.mxu0 %v4852_v17 }
 0x1db   :  { %2270 = vmatpush1.bf16.msra.mxu0 %v4850_v60  ;;  %v5083_v60 = vmov 0  }
 0x1dc   :  { %2271 = vmatprep.subr.bf16.mxu0 %v4855_v18  ;;  %4380 = vset.pattern.permute.xlu0 %v5083_v60 }
 0x1df   :  { %2272 = vmatpush1.bf16.msra.mxu0 %v4853_v1 }
 0x1e0   :  { %2273 = vmatprep.subr.bf16.mxu0 %v4858_v19 }
 0x1e3   :  { %2274 = vmatpush1.bf16.msra.mxu0 %v4856_v20 }
 0x1e4   :  { %2275 = vmatprep.subr.bf16.mxu0 %v4861_v22 }
 0x1e7   :  { %2276 = vmatpush1.bf16.msra.mxu0 %v4859_v23 }
 0x1e8   :  { %2277 = vmatprep.subr.bf16.mxu0 %v4864_v24 }
 0x1eb   :  { %2278 = vmatpush1.bf16.msra.mxu0 %v4862_v25 }
 0x1ec   :  { %2279 = vmatprep.subr.bf16.mxu0 %v4867_v26  ;;  %v5084_v26 = vmov 0.0  }
 0x1ed   :  { %4318 = vmatprep.subr.mxu1 %v5084_v26  ;;  %4320 = vmatprep.mubr.msk.f32.mxu1 %vm5086_vm1, %v5084_v26 }
 0x1ef   :  { %2280 = vmatpush1.bf16.msra.mxu0 %v4865_v28  ;;  %v427_v28 = vsub.s32 4, %v5249_v30 }
 0x1f0   :  { %2281 = vmatprep.subr.bf16.mxu0 %v4870_v29  ;;  %v431_v29 = vsub.s32 5, %v5249_v30 }
 0x1f3   :  { %2282 = vmatpush1.bf16.msra.mxu0 %v4868_v31  ;;  %v428_v31 = vrot.slane %v5252_v34, %v427_v28 }
 0x1f4   :  { %2283 = vmatprep.subr.bf16.mxu0 %v4873_v32  ;;  %v432_v32 = vrot.slane %v5252_v34, %v431_v29 }
 0x1f7   :  { %2284 = vmatpush1.bf16.msra.mxu0 %v4871_v36 }
 0x1f8   :  { %4313 = vmatprep.subr.mxu0 %v5084_v26 }
 0x1fa   :  { %2286 = vmatmul.mubr.bf16.vlgmr.msra.gmra.mrb[4].mxu0 %v5232_v62  ;;  %v412_v62 = vrot.slane %v5252_v34, %v5271_v49 }
 0x1fb   :  { %4315 = vmatprep.mubr.msk.f32.mxu0 %vm5086_vm1, %v5084_v26 }
 0x204   :  { %v2158_v39 = vpop.f32.mrb[0].mxu1 }
 0x205   :  { %v5257_v40 = vadd.f32 %v2158_v39, %v420_v37  ;;  %v2160_v41 = vpop.f32.mrb[1].mxu1 }
 0x206   :  { %v5259_v42 = vadd.f32 %v2160_v41, %v424_v38  ;;  %v2162_v43 = vpop.f32.mrb[2].mxu1 }
 0x207   :  { %v5262_v44 = vadd.f32 %v2162_v43, %v420_v37  ;;  %v2164_v45 = vpop.f32.mrb[3].mxu1 }
 0x208   :  { %v4208_v46 = vpack.c.bf16 %v5259_v42, %v5257_v40  ;;  %v5266_v47 = vadd.f32 %v2164_v45, %v424_v38 }
 0x209   :  { %v2029_v52 = vpop.f32.mrb[0].mxu0 }
 0x20a   :  { %2333 = vst [vmem:[#allocation13 + $0x8] sm:$0xff] %v4208_v46  ;;  %v4211_v48 = vpack.c.bf16 %v5266_v47, %v5262_v44  ;;  %v5277_v53 = vadd.f32 %v2029_v52, %v412_v62  ;;  %v2031_v54 = vpop.f32.mrb[1].mxu0 }
 0x20b   :  { %v5279_v55 = vadd.f32 %v2031_v54, %v416_v51  ;;  %v2033_v56 = vpop.f32.mrb[2].mxu0 }
 0x20c   :  { %2336 = vst [vmem:[#allocation13 + $0x20] sm:$0xff] %v4211_v48  ;;  %v5281_v57 = vadd.f32 %v2033_v56, %v412_v62  ;;  %v2035_v58 = vpop.f32.mrb[3].mxu0  ;;  %v2852_v62 = vld [vmem:[%s5558_s1] sm:$0xff] }
 0x20d   :  { %v4207_v59 = vpack.c.bf16 %v5279_v55, %v5277_v53  ;;  %v5285_v61 = vadd.f32 %v2035_v58, %v416_v51  ;;  %vm2856_vm2 = vcmp.gt.f32.partialorder %v2852_v62, 0.0  ;;  %v5317_v58 = vand.u32 127, %v409_v27 }
 0x20e   :  { %v3061_v56 = vsel %vm2856_vm2, 1, %v5083_v60  ;;  %v3094_v27 = vpack.c.bf16 %v5279_v55, %v5279_v55  ;;  %v4875_v55 = vld [vmem:[%s5564_s7 + $0x8] sm:$0xff]  }
 0x20f   :  { %2332 = vst [vmem:[#allocation13] sm:$0xff] %v4207_v59  ;;  %v4210_v63 = vpack.c.bf16 %v5285_v61, %v5281_v57  ;;  %vm2875_vm3 = vcmp.eq.s32.totalorder %v5317_v58, %v5249_v30  ;;  %vm2872_vm4 = vcmp.ge.s32.totalorder %v5317_v58, %v5249_v30 }
 0x210   :  { %v4147_v59 = vsel %vm2875_vm3, 1.0, %v5084_v26 }
 0x211   :  { %2335 = vst [vmem:[#allocation13 + $0x18] sm:$0xff] %v4210_v63  ;;  %v4146_v63 = vsel %vm2872_vm4, 1.0, %v5084_v26 }
 0x224   :  { %v4259_v0 = vpop.f32.mrb[4].mxu1 }
 0x225   :  { %v4260_v2 = vpop.f32.mrb[5].mxu1 }
 0x226   :  { %v4261_v3 = vadd.f32 %v4260_v2, %v4259_v0  ;;  %v4262_v4 = vpop.f32.mrb[6].mxu1 }
 0x227   :  { %v4263_v5 = vpop.f32.mrb[7].mxu1 }
 0x228   :  { %v4264_v6 = vadd.f32 %v4263_v5, %v4262_v4  ;;  %v2764_v10 = vadd.f32 %v4261_v3, %v4097_v7  ;;  %v3093_v4 = vpack.c.bf16 %v5277_v53, %v5277_v53  ;;  %v5340_v53 = vld [vmem:[%s5564_s7] sm:$0xff]  }
 0x22a   :  { %v2767_v14 = vadd.f32 %v4264_v6, %v4097_v7  ;;  %v3095_v6 = vpack.c.bf16 %v5257_v40, %v5257_v40  ;;  %v3096_v7 = vpack.c.bf16 %v5259_v42, %v5259_v42 }
 0x22c   :  { %v3140_v42 = vsel %vm3132_vm6, %v3095_v6, 0 }
 0x244   :  { %v4281_v8 = vpop.f32.mrb[8].mxu1 }
 0x245   :  { %v4282_v9 = vpop.f32.mrb[9].mxu1 }
 0x246   :  { %v4283_v11 = vadd.f32 %v4282_v9, %v4281_v8  ;;  %v4284_v12 = vpop.f32.mrb[10].mxu1  ;;  %v3134_v8 = vsel %vm3132_vm6, %v3093_v4, 0 }
 0x247   :  { %v4285_v13 = vpop.f32.mrb[11].mxu1 }
 0x248   :  { %v2805_v15 = vadd.f32 %v4283_v11, %v2764_v10  ;;  %v4286_v16 = vadd.f32 %v4285_v13, %v4284_v12  ;;  %v3101_v13 = vpack.c.bf16 %v5262_v44, %v5262_v44 }
 0x24a   :  { %v2808_v17 = vadd.f32 %v4286_v16, %v2767_v14  ;;  %v4876_v16 = vld [vmem:[%s5564_s7 + $0x10] ss:$0 sps:$4 sm:$0x33]   ;;  %s5087_s7 = smov [#allocation13]  }
 0x24b   :  { %s3762_s17 = sshll.u32 %s5087_s7, 4  ;;  %s3763_s17 = int_to_ptr.vmem [resolvable:$true] %s3762_s17 }
 0x24c   :  { %s5014_s18 = scalar_lea.vmem %s3763_s17, 768  ;;  %p5019_p7 = scmp.lt.s32.totalorder %s3763_s17, %s3763_s17 }
 0x24d   :  { %p5015_p6 = scmp.ne.s32.totalorder %s3763_s17, %s5014_s18  ;;  %p5020_p8 = scmp.lt.s32.totalorder %s5014_s18, %s5014_s18 }
 0x24f   :  { %p5021_p9 = por %p5020_p8, %p5019_p7 }
 0x251   :  { %p5022_p10 = pnand %p5021_p9, %p5015_p6 }
 0x264   :  { %v4303_v18 = vpop.f32.mrb[12].mxu1 }
 0x265   :  { %v4304_v1 = vpop.f32.mrb[13].mxu1 }
 0x266   :  { %v4305_v19 = vadd.f32 %v4304_v1, %v4303_v18  ;;  %v4306_v20 = vpop.f32.mrb[14].mxu1 }
 0x267   :  { %v4307_v22 = vpop.f32.mrb[15].mxu1 }
 0x268   :  { %v2846_v23 = vadd.f32 %v4305_v19, %v2805_v15  ;;  %v4308_v24 = vadd.f32 %v4307_v22, %v4306_v20  ;;  %v3102_v15 = vpack.c.bf16 %v5266_v47, %v5266_v47  ;;  %v3100_v47 = vpack.c.bf16 %v5285_v61, %v5285_v61  ;;  %v2855_v22 = vld [vmem:[#allocation5 + $0x1] sm:$0x1] }
 0x269   :  { %v3099_v61 = vpack.c.bf16 %v5281_v57, %v5281_v57  ;;  %vm3074_vm7 = vcmp.gt.f32.partialorder %v2855_v22, 0.0 }
 0x26a   :  { %v2849_v25 = vadd.f32 %v4308_v24, %v2808_v17  ;;  %v3341_v17 = vsel %vm3132_vm6, %v3101_v13, 0  ;;  %v3056_v24 = vsub.s32 %v5317_v58, %v5249_v30 }
 0x26b   :  { %v3335_v19 = vsel %vm3132_vm6, %v3099_v61, 0 }
 0x26c   :  { %2895 = vperm.xlu1 %4381, %v2849_v25   ;;  %2862 = vrot.lane.b32.xlu0 %v2849_v25, %s5085_s6  ;;  %vm5418_vm8 = vcmp.lt.s32.totalorder %v3056_v24, 10 }
 0x270   :  { %2860 = vrot.lane.b32.xlu1 %v2846_v23, %s5085_s6 }
 0x271   :  { %4382 = vset.pattern.permute.xlu1 %v5083_v60 }
 0x2cd   :  { %v2287_v35 = vpop.f32.mrb[4].mxu0 }
 0x2ce   :  { %v5298_v36 = vadd.f32 %v2287_v35, %v428_v31  ;;  %v2289_v37 = vpop.f32.mrb[5].mxu0 }
 0x2cf   :  { %v4332_v38 = vadd.f32 %v2289_v37, %v432_v32  ;;  %v2291_v39 = vpop.f32.mrb[6].mxu0 }
 0x2d0   :  { %v5300_v41 = vadd.f32 %v2291_v39, %v428_v31  ;;  %v2293_v43 = vpop.f32.mrb[7].mxu0  ;;  %v3097_v44 = vpack.c.bf16 %v5298_v36, %v5298_v36 }
 0x2d1   :  { %v4209_v45 = vpack.c.bf16 %v4332_v38, %v5298_v36  ;;  %v5303_v46 = vadd.f32 %v2293_v43, %v432_v32  ;;  %v3098_v40 = vpack.c.bf16 %v4332_v38, %v4332_v38 }
 0x2d2   :  { %v3146_v18 = vsel %vm3132_vm6, %v3097_v44, 0  ;;  %v3103_v57 = vpack.c.bf16 %v5300_v41, %v5300_v41 }
 0x2d3   :  { %2334 = vst [vmem:[#allocation13 + $0x10] sm:$0xff] %v4209_v45  ;;  %v4212_v50 = vpack.c.bf16 %v5303_v46, %v5300_v41  ;;  %v3104_v1 = vpack.c.bf16 %v5303_v46, %v5303_v46 }
 0x2d4   :  { %v3347_v20 = vsel %vm3132_vm6, %v3103_v57, 0 }
 0x2d5   :  { %2337 = vst [vmem:[#allocation13 + $0x28] sm:$0xff] %v4212_v50 }
 0x2de   :  { %v2863_v48 = vpop.permute.xlu0 %2862 }
 0x2df   :  { %v2867_v34 = vsel %vm2857_vm0, %v2863_v48, 0.0 }
 0x2e0   :  { %2885 = vperm.xlu0 %4380, %v2867_v34  }
 0x2e4   :  { %4383 = vset.pattern.permute.xlu0 %v5082_v21  ;;  %v3062_v21 = vsel %vm2857_vm0, 1, %v5083_v60 }
 0x2e5   :  { %2891 = vperm.xlu0 %4383, %v2846_v23  }
 0x2e9   :  { %4384 = vset.pattern.permute.xlu0 %v5083_v60 }
 0x2ea   :  { %3047 = vperm.xlu0 %4384, %v2846_v23  }
 0x2eb   :  { %v2896_v51 = vpop.permute.xlu1 %2895 }
 0x2ec   :  { %v2899_v2 = vmul.f32 %v4147_v59, %v2896_v51 }
 0x2ef   :  { %v2861_v52 = vpop.permute.xlu1 %2860 }
 0x2f0   :  { %v2866_v54 = vsel %vm2856_vm2, %v2861_v52, 0.0 }
 0x2f1   :  { %2880 = vperm.xlu1 %4382, %v2866_v54  }
 0x2f5   :  { %3064 = vperm.xlu1 %4382, %v3061_v56  }
 0x2f9   :  { %3067 = vperm.xlu1 %4382, %v3062_v21  }
 0x2fd   :  { %3051 = vperm.xlu1 %4382, %v2849_v25   ;;  %v3076_v25 = vsel %vm3074_vm7, 1, %v5083_v60 }
 0x35f   :  { %v2886_v0 = vpop.permute.xlu0 %2885 }
 0x360   :  { %v2889_v3 = vmul.f32 %v4146_v63, %v2886_v0 }
 0x362   :  { %v2901_v5 = vadd.f32 %v2899_v2, %v2889_v3 }
 0x364   :  { %4319 = vmatpush3.msra.mxu1 %v2901_v5  ;;  %v2892_v9 = vpop.permute.xlu0 %2891 }
 0x365   :  { %4321 = vmatmul.mubr.msk.f32.vlgmr.msra.gmra.mrb[16].mxu1 %vm2902_vm5, %v4146_v63  ;;  %4153 = vmatprep.subr.msk.bf16.mxu1 %vm3132_vm6, %v3094_v27  ;;  %v2898_v11 = vmul.f32 %v4147_v59, %v2892_v9 }
 0x366   :  { %3152 = vmatpush1.bf16.msra.mxu1 %v3134_v8  ;;  %3183 = vmatprep.mubr.bf16.mxu1 %v5083_v60 }
 0x367   :  { %4157 = vmatprep.subr.msk.bf16.mxu1 %vm3132_vm6, %v3096_v7 }
 0x369   :  { %4154 = vmatmul.mubr.msk.bf16.vlgmr.msra.gmra.mrb[20].mxu1 %vm2902_vm5, %v5340_v53 }
 0x36a   :  { %3213 = vmatpush1.bf16.msra.mxu1 %v3140_v42  ;;  %3193 = vmatprep.mubr.bf16.mxu1 %v5083_v60 }
 0x36b   :  { %4161 = vmatprep.subr.msk.bf16.mxu1 %vm3132_vm6, %v3098_v40 }
 0x370   :  { %v2881_v10 = vpop.permute.xlu1 %2880 }
 0x371   :  { %v2888_v12 = vmul.f32 %v4146_v63, %v2881_v10  ;;  %4155 = vmatmul.mubr.msk.bf16.gmra.mrb[24].mxu1 %vm2902_vm5, %v4875_v55 }
 0x372   :  { %3203 = vmatprep.mubr.bf16.mxu1 %v5083_v60 }
 0x373   :  { %v2900_v14 = vadd.f32 %v2898_v11, %v2888_v12 }
 0x374   :  { %v3065_v23 = vpop.permute.xlu1 %3064 }
 0x375   :  { %4314 = vmatpush3.msra.mxu0 %v2900_v14 }
 0x376   :  { %4316 = vmatmul.mubr.msk.f32.vlgmr.msra.gmra.mrb[8].mxu0 %vm2902_vm5, %v4146_v63  ;;  %4169 = vmatprep.subr.msk.bf16.mxu0 %vm3132_vm6, %v3102_v15 }
 0x377   :  { %3414 = vmatpush1.bf16.msra.mxu0 %v3341_v17  ;;  %3445 = vmatprep.mubr.bf16.mxu0 %v5083_v60 }
 0x379   :  { %4156 = vmatmul.mubr.msk.bf16.gmra.mrb[28].mxu1 %vm2902_vm5, %v4876_v16 }
 0x37a   :  { %3244 = vmatprep.mubr.bf16.mxu1 %v5083_v60  ;;  %4170 = vmatmul.mubr.msk.bf16.vlgmr.msra.gmra.mrb[12].mxu0 %vm2902_vm5, %v5340_v53 }
 0x37b   :  { %3455 = vmatprep.mubr.bf16.mxu0 %v5083_v60 }
 0x381   :  { %4158 = vmatmul.mubr.msk.bf16.vlgmr.msra.gmra.mrb[32].mxu1 %vm2902_vm5, %v5340_v53 }
 0x382   :  { %3274 = vmatpush1.bf16.msra.mxu1 %v3146_v18  ;;  %3254 = vmatprep.mubr.bf16.mxu1 %v5083_v60 }
 0x383   :  { %4165 = vmatprep.subr.msk.bf16.mxu1 %vm3132_vm6, %v3100_v47  ;;  %4171 = vmatmul.mubr.msk.bf16.gmra.mrb[16].mxu0 %vm2902_vm5, %v4875_v55 }
 0x384   :  { %3465 = vmatprep.mubr.bf16.mxu0 %v5083_v60 }
 0x389   :  { %4159 = vmatmul.mubr.msk.bf16.gmra.mrb[36].mxu1 %vm2902_vm5, %v4875_v55 }
 0x38a   :  { %3264 = vmatprep.mubr.bf16.mxu1 %v5083_v60 }
 0x38b   :  { %4172 = vmatmul.mubr.msk.bf16.gmra.mrb[20].mxu0 %vm2902_vm5, %v4876_v16 }
 0x391   :  { %4160 = vmatmul.mubr.msk.bf16.gmra.mrb[40].mxu1 %vm2902_vm5, %v4876_v16 }
 0x392   :  { %3305 = vmatprep.mubr.bf16.mxu1 %v5083_v60 }
 0x399   :  { %4162 = vmatmul.mubr.msk.bf16.vlgmr.msra.gmra.mrb[44].mxu1 %vm2902_vm5, %v5340_v53 }
 0x39a   :  { %3353 = vmatpush1.bf16.msra.mxu1 %v3335_v19  ;;  %3315 = vmatprep.mubr.bf16.mxu1 %v5083_v60 }
 0x39b   :  { %4173 = vmatprep.subr.msk.bf16.mxu1 %vm3132_vm6, %v3104_v1 }
 0x3a1   :  { %4163 = vmatmul.mubr.msk.bf16.gmra.mrb[48].mxu1 %vm2902_vm5, %v4875_v55 }
 0x3a2   :  { %3325 = vmatprep.mubr.bf16.mxu1 %v5083_v60 }
 0x3a9   :  { %4164 = vmatmul.mubr.msk.bf16.gmra.mrb[52].mxu1 %vm2902_vm5, %v4876_v16 }
 0x3aa   :  { %3384 = vmatprep.mubr.bf16.mxu1 %v5083_v60 }
 0x3b1   :  { %4166 = vmatmul.mubr.msk.bf16.vlgmr.msra.gmra.mrb[56].mxu1 %vm2902_vm5, %v5340_v53 }
 0x3b2   :  { %3475 = vmatpush1.bf16.msra.mxu1 %v3347_v20  ;;  %3394 = vmatprep.mubr.bf16.mxu1 %v5083_v60 }
 0x3b9   :  { %4167 = vmatmul.mubr.msk.bf16.gmra.mrb[60].mxu1 %vm2902_vm5, %v4875_v55 }
 0x3ba   :  { %3404 = vmatprep.mubr.bf16.mxu1 %v5083_v60 }
 0x3c1   :  { %4168 = vmatmul.mubr.msk.bf16.gmra.mrb[64].mxu1 %vm2902_vm5, %v4876_v16 }
 0x3c2   :  { %3506 = vmatprep.mubr.bf16.mxu1 %v5083_v60 }
 0x3c9   :  { %4174 = vmatmul.mubr.msk.bf16.vlgmr.msra.gmra.mrb[68].mxu1 %vm2902_vm5, %v5340_v53 }
 0x3ca   :  { %3516 = vmatprep.mubr.bf16.mxu1 %v5083_v60 }
 0x3d1   :  { %4175 = vmatmul.mubr.msk.bf16.gmra.mrb[72].mxu1 %vm2902_vm5, %v4875_v55 }
 0x3d2   :  { %3526 = vmatprep.mubr.bf16.mxu1 %v5083_v60 }
 0x3d9   :  { %4176 = vmatmul.mubr.msk.bf16.gmra.mrb[76].mxu1 %vm2902_vm5, %v4876_v16 }
 0x3da   :  { %5025 = shalt.err (!%p5022_p10)
}
 0x3db   :  { %s5026_s19 = scalar_lea.hbm %s5565_s8, 768 }
 0x3dc   :  { %p5027_p11 = scmp.ne.s32.totalorder %s5565_s8, %s5026_s19  ;;  %p5030_p12 = scmp.lt.u32.totalorder %s5026_s19, %s5565_s8 }
 0x3de   :  { %p5032_p13 = pnand %p5030_p12, %p5027_p11 }
 0x3e0   :  { %5035 = shalt.err (!%p5032_p13)
}
 0x3e1   :  { %3768 = dma.vmem_to_hbm [thread:$0]  %s3763_s17, 768, %s5565_s8, [#allocation4], %s5075_s4, %s5075_s4, %s5076_s28   ;;  %v3068_v28 = vpop.permute.xlu1 %3067  ;;  %v3084_v29 = vrot.slane %v3076_v25, %v5271_v49  ;;  %vm5443_vm9 = vmand %vm2872_vm4, %vm5418_vm8  ;;  %v2854_v37 = vld [vmem:[#allocation5] sm:$0x1]  ;;  %vm3069_vm15 = vcmp.eq.s32.totalorder %v3065_v23, 1  ;;  %v3048_v56 = vpop.permute.xlu0 %3047 }
 0x3e2   :  { %vm3070_vm10 = vcmp.eq.s32.totalorder %v3068_v28, 1  ;;  %vm3073_vm14 = vcmp.gt.f32.partialorder %v2854_v37, 0.0  ;;  %s5088_s16 = smov [#allocation14]   ;;  %vm3071_vm1 = vmand %vm5443_vm9, %vm3069_vm15 }
 0x3e3   :  { %vm3086_vm11 = vcmp.eq.s32.totalorder %v3084_v29, 1  ;;  %vm3072_vm12 = vmand %vm5443_vm9, %vm3070_vm10  ;;  %v3075_v48 = vsel %vm3073_vm14, 1, %v5083_v60  ;;  %s3774_s24 = sshll.u32 %s5088_s16, 4  ;;  %s3775_s24 = int_to_ptr.vmem [resolvable:$true] %s3774_s24 }
 0x3e4   :  { %vm3088_vm13 = vmand %vm3072_vm12, %vm3086_vm11  ;;  %v3080_v34 = vrot.slane %v3075_v48, %v5271_v49  ;;  %s5036_s29 = scalar_lea.vmem %s3775_s24, 256  ;;  %p5041_p1 = scmp.lt.s32.totalorder %s3775_s24, %s3775_s24 }
 0x3e5   :  { %v3052_v32 = vpop.permute.xlu1 %3051  ;;  %p5037_p0 = scmp.ne.s32.totalorder %s3775_s24, %s5036_s29  ;;  %p5042_p2 = scmp.lt.s32.totalorder %s5036_s29, %s5036_s29 }
 0x3e6   :  { %vm3085_vm0 = vcmp.eq.s32.totalorder %v3080_v34, 1 }
 0x3e7   :  { %vm3087_vm2 = vmand %vm3071_vm1, %vm3085_vm0  ;;  %p5043_p3 = por %p5042_p2, %p5041_p1 }
 0x3e9   :  { %p5044_p4 = pnand %p5043_p3, %p5037_p0 }
 0x438   :  { %v3042_v33 = vpop.f32.mrb[16].mxu1 }
 0x439   :  { %v3055_v35 = vadd.f32 %v3052_v32, %v3042_v33  ;;  %v4322_v36 = vpop.f32.mrb[17].mxu1 }
 0x43b   :  { %v3090_v38 = vsel %vm3088_vm13, %v3055_v35, -inf }
 0x43c   :  { %3092 = vst.msk [vmem:[#allocation14 + $0x8] sm:$0xff] %vm2902_vm5, %v3090_v38  ;;  %v3185_v39 = vpop.f32.mrb[20].mxu1 }
 0x43d   :  { %v3187_v30 = vpop.f32.mrb[21].mxu1 }
 0x43e   :  { %v4213_v41 = vpack.c.bf16 %v3187_v30, %v3185_v39  ;;  %v3189_v43 = vpop.f32.mrb[22].mxu1 }
 0x43f   :  { %v3191_v45 = vpop.f32.mrb[23].mxu1 }
 0x440   :  { %3727 = vst [vmem:[%s5567_s10] sm:$0xff] %v4213_v41  ;;  %v4216_v46 = vpack.c.bf16 %v3191_v45, %v3189_v43 }
 0x442   :  { %3730 = vst [vmem:[%s5567_s10 + $0x18] sm:$0xff] %v4216_v46 }
 0x444   :  { %v3195_v50 = vpop.f32.mrb[24].mxu1 }
 0x445   :  { %v3197_v62 = vpop.f32.mrb[25].mxu1 }
 0x446   :  { %v4219_v51 = vpack.c.bf16 %v3197_v62, %v3195_v50  ;;  %v3199_v52 = vpop.f32.mrb[26].mxu1 }
 0x447   :  { %v3201_v54 = vpop.f32.mrb[27].mxu1 }
 0x448   :  { %3733 = vst [vmem:[%s5567_s10 + $0x30] sm:$0xff] %v4219_v51  ;;  %v4222_v60 = vpack.c.bf16 %v3201_v54, %v3199_v52 }
 0x449   :  { %v2972_v21 = vpop.f32.mrb[8].mxu0 }
 0x44a   :  { %v3054_v49 = vadd.f32 %v3048_v56, %v2972_v21  ;;  %3736 = vst [vmem:[%s5567_s10 + $0x48] sm:$0xff] %v4222_v60  ;;  %v4317_v58 = vpop.f32.mrb[9].mxu0 }
 0x44c   :  { %v3089_v59 = vsel %vm3087_vm2, %v3054_v49, -inf  ;;  %v3205_v63 = vpop.f32.mrb[28].mxu1 }
 0x44d   :  { %3091 = vst.msk [vmem:[#allocation14] sm:$0xff] %vm2902_vm5, %v3089_v59  ;;  %v3207_v0 = vpop.f32.mrb[29].mxu1  ;;  %v3447_v2 = vpop.f32.mrb[12].mxu0 }
 0x44e   :  { %v4225_v3 = vpack.c.bf16 %v3207_v0, %v3205_v63  ;;  %v3209_v4 = vpop.f32.mrb[30].mxu1  ;;  %v3449_v5 = vpop.f32.mrb[13].mxu0 }
 0x44f   :  { %5047 = shalt.err (!%p5044_p4)
}
 0x450   :  { %s5048_s12 = scalar_lea.hbm %s5566_s9, 256 }
 0x451   :  { %p5049_p5 = scmp.ne.s32.totalorder %s5566_s9, %s5048_s12  ;;  %p5052_p6 = scmp.lt.u32.totalorder %s5048_s12, %s5566_s9 }
 0x453   :  { %p5054_p7 = pnand %p5052_p6, %p5049_p5 }
 0x455   :  { %5057 = shalt.err (!%p5054_p7)
}
 0x456   :  { %s5089_s17 = smov 128   ;;  %s5090_s18 = smov 8   ;;  %v3210_v27 = vpop.f32.mrb[31].mxu1  ;;  %v4229_v6 = vpack.c.bf16 %v3449_v5, %v3447_v2  ;;  %v3451_v7 = vpop.f32.mrb[14].mxu0  ;;  %3739 = vst [vmem:[%s5567_s10 + $0x60] sm:$0x33] %v4225_v3 }
 0x457   :  { %3780 = dma.vmem_to_hbm [thread:$0]  %s3775_s24, 256, %s5566_s9, [#allocation15], %s5089_s17, %s5089_s17, %s5090_s18   ;;  %v3453_v8 = vpop.f32.mrb[15].mxu0  ;;  %v3246_v40 = vpop.f32.mrb[32].mxu1 }
 0x458   :  { %3743 = vst [vmem:[%s5567_s10 + $0x80] sm:$0xff] %v4229_v6  ;;  %v4232_v53 = vpack.c.bf16 %v3453_v8, %v3451_v7  ;;  %v3248_v42 = vpop.f32.mrb[33].mxu1  ;;  %v3457_v10 = vpop.f32.mrb[16].mxu0 }
 0x459   :  { %v4214_v55 = vpack.c.bf16 %v3248_v42, %v3246_v40  ;;  %v3250_v9 = vpop.f32.mrb[34].mxu1  ;;  %v3459_v12 = vpop.f32.mrb[17].mxu0 }
 0x45a   :  { %3746 = vst [vmem:[%s5567_s10 + $0x98] sm:$0xff] %v4232_v53  ;;  %v3252_v11 = vpop.f32.mrb[35].mxu1  ;;  %v4235_v14 = vpack.c.bf16 %v3459_v12, %v3457_v10  ;;  %v3461_v15 = vpop.f32.mrb[18].mxu0 }
 0x45b   :  { %3728 = vst [vmem:[%s5567_s10 + $0x8] sm:$0xff] %v4214_v55  ;;  %v4217_v13 = vpack.c.bf16 %v3252_v11, %v3250_v9  ;;  %v3463_v16 = vpop.f32.mrb[19].mxu0 }
 0x45c   :  { %3749 = vst [vmem:[%s5567_s10 + $0xb0] sm:$0xff] %v4235_v14  ;;  %v4238_v17 = vpack.c.bf16 %v3463_v16, %v3461_v15  ;;  %v3256_v44 = vpop.f32.mrb[36].mxu1 }
 0x45d   :  { %3731 = vst [vmem:[%s5567_s10 + $0x20] sm:$0xff] %v4217_v13  ;;  %v3258_v47 = vpop.f32.mrb[37].mxu1 }
 0x45e   :  { %3752 = vst [vmem:[%s5567_s10 + $0xc8] sm:$0xff] %v4238_v17  ;;  %v4220_v18 = vpack.c.bf16 %v3258_v47, %v3256_v44  ;;  %v3260_v61 = vpop.f32.mrb[38].mxu1  ;;  %v3467_v1 = vpop.f32.mrb[20].mxu0 }
 0x45f   :  { %v3262_v19 = vpop.f32.mrb[39].mxu1  ;;  %v3469_v57 = vpop.f32.mrb[21].mxu0 }
 0x460   :  { %3734 = vst [vmem:[%s5567_s10 + $0x38] sm:$0xff] %v4220_v18  ;;  %v4223_v20 = vpack.c.bf16 %v3262_v19, %v3260_v61  ;;  %v4241_v22 = vpack.c.bf16 %v3469_v57, %v3467_v1  ;;  %v3471_v23 = vpop.f32.mrb[22].mxu0 }
 0x461   :  { %v3472_v24 = vpop.f32.mrb[23].mxu0 }
 0x462   :  { %3737 = vst [vmem:[%s5567_s10 + $0x50] sm:$0xff] %v4223_v20  ;;  %3755 = vst [vmem:[%s5567_s10 + $0xe0] sm:$0x33] %v4241_v22 }
 0x464   :  { %v3266_v25 = vpop.f32.mrb[40].mxu1 }
 0x465   :  { %v3268_v26 = vpop.f32.mrb[41].mxu1 }
 0x466   :  { %v4226_v28 = vpack.c.bf16 %v3268_v26, %v3266_v25  ;;  %v3270_v29 = vpop.f32.mrb[42].mxu1 }
 0x467   :  { %v3271_v31 = vpop.f32.mrb[43].mxu1 }
 0x468   :  { %3740 = vst [vmem:[%s5567_s10 + $0x68] sm:$0x33] %v4226_v28 }
 0x46c   :  { %v3307_v32 = vpop.f32.mrb[44].mxu1 }
 0x46d   :  { %v3309_v33 = vpop.f32.mrb[45].mxu1 }
 0x46e   :  { %v4215_v35 = vpack.c.bf16 %v3309_v33, %v3307_v32  ;;  %v3311_v36 = vpop.f32.mrb[46].mxu1 }
 0x46f   :  { %v3313_v37 = vpop.f32.mrb[47].mxu1 }
 0x470   :  { %3729 = vst [vmem:[%s5567_s10 + $0x10] sm:$0xff] %v4215_v35  ;;  %v4218_v38 = vpack.c.bf16 %v3313_v37, %v3311_v36 }
 0x472   :  { %3732 = vst [vmem:[%s5567_s10 + $0x28] sm:$0xff] %v4218_v38 }
 0x474   :  { %v3317_v39 = vpop.f32.mrb[48].mxu1 }
 0x475   :  { %v3319_v30 = vpop.f32.mrb[49].mxu1 }
 0x476   :  { %v4221_v41 = vpack.c.bf16 %v3319_v30, %v3317_v39  ;;  %v3321_v43 = vpop.f32.mrb[50].mxu1 }
 0x477   :  { %v3323_v45 = vpop.f32.mrb[51].mxu1 }
 0x478   :  { %3735 = vst [vmem:[%s5567_s10 + $0x40] sm:$0xff] %v4221_v41  ;;  %v4224_v46 = vpack.c.bf16 %v3323_v45, %v3321_v43 }
 0x47a   :  { %3738 = vst [vmem:[%s5567_s10 + $0x58] sm:$0xff] %v4224_v46 }
 0x47c   :  { %v3327_v48 = vpop.f32.mrb[52].mxu1 }
 0x47d   :  { %v3329_v34 = vpop.f32.mrb[53].mxu1 }
 0x47e   :  { %v4227_v50 = vpack.c.bf16 %v3329_v34, %v3327_v48  ;;  %v3331_v62 = vpop.f32.mrb[54].mxu1 }
 0x47f   :  { %v3332_v51 = vpop.f32.mrb[55].mxu1 }
 0x480   :  { %3741 = vst [vmem:[%s5567_s10 + $0x70] sm:$0x33] %v4227_v50 }
 0x484   :  { %v3386_v52 = vpop.f32.mrb[56].mxu1 }
 0x485   :  { %v3388_v54 = vpop.f32.mrb[57].mxu1 }
 0x486   :  { %v4228_v60 = vpack.c.bf16 %v3388_v54, %v3386_v52  ;;  %v3390_v56 = vpop.f32.mrb[58].mxu1 }
 0x487   :  { %v3392_v21 = vpop.f32.mrb[59].mxu1 }
 0x488   :  { %3742 = vst [vmem:[%s5567_s10 + $0x78] sm:$0xff] %v4228_v60  ;;  %v4231_v49 = vpack.c.bf16 %v3392_v21, %v3390_v56 }
 0x48a   :  { %3745 = vst [vmem:[%s5567_s10 + $0x90] sm:$0xff] %v4231_v49 }
 0x48c   :  { %v3396_v58 = vpop.f32.mrb[60].mxu1 }
 0x48d   :  { %v3398_v59 = vpop.f32.mrb[61].mxu1 }
 0x48e   :  { %v4234_v63 = vpack.c.bf16 %v3398_v59, %v3396_v58  ;;  %v3400_v0 = vpop.f32.mrb[62].mxu1 }
 0x48f   :  { %v3402_v2 = vpop.f32.mrb[63].mxu1 }
 0x490   :  { %3748 = vst [vmem:[%s5567_s10 + $0xa8] sm:$0xff] %v4234_v63  ;;  %v4237_v3 = vpack.c.bf16 %v3402_v2, %v3400_v0 }
 0x492   :  { %3751 = vst [vmem:[%s5567_s10 + $0xc0] sm:$0xff] %v4237_v3 }
 0x494   :  { %v3406_v4 = vpop.f32.mrb[64].mxu1 }
 0x495   :  { %v3408_v5 = vpop.f32.mrb[65].mxu1 }
 0x496   :  { %v4240_v27 = vpack.c.bf16 %v3408_v5, %v3406_v4  ;;  %v3410_v6 = vpop.f32.mrb[66].mxu1 }
 0x497   :  { %v3411_v7 = vpop.f32.mrb[67].mxu1 }
 0x498   :  { %3754 = vst [vmem:[%s5567_s10 + $0xd8] sm:$0x33] %v4240_v27 }
 0x49c   :  { %v3508_v8 = vpop.f32.mrb[68].mxu1 }
 0x49d   :  { %v3510_v53 = vpop.f32.mrb[69].mxu1 }
 0x49e   :  { %v4230_v40 = vpack.c.bf16 %v3510_v53, %v3508_v8  ;;  %v3512_v42 = vpop.f32.mrb[70].mxu1 }
 0x49f   :  { %v3514_v55 = vpop.f32.mrb[71].mxu1 }
 0x4a0   :  { %3744 = vst [vmem:[%s5567_s10 + $0x88] sm:$0xff] %v4230_v40  ;;  %v4233_v9 = vpack.c.bf16 %v3514_v55, %v3512_v42 }
 0x4a2   :  { %3747 = vst [vmem:[%s5567_s10 + $0xa0] sm:$0xff] %v4233_v9 }
 0x4a4   :  { %v3518_v10 = vpop.f32.mrb[72].mxu1 }
 0x4a5   :  { %v3520_v11 = vpop.f32.mrb[73].mxu1 }
 0x4a6   :  { %v4236_v12 = vpack.c.bf16 %v3520_v11, %v3518_v10  ;;  %v3522_v13 = vpop.f32.mrb[74].mxu1 }
 0x4a7   :  { %v3524_v14 = vpop.f32.mrb[75].mxu1 }
 0x4a8   :  { %3750 = vst [vmem:[%s5567_s10 + $0xb8] sm:$0xff] %v4236_v12  ;;  %v4239_v15 = vpack.c.bf16 %v3524_v14, %v3522_v13 }
 0x4aa   :  { %3753 = vst [vmem:[%s5567_s10 + $0xd0] sm:$0xff] %v4239_v15 }
 0x4ac   :  { %v3528_v16 = vpop.f32.mrb[76].mxu1 }
 0x4ad   :  { %v3530_v17 = vpop.f32.mrb[77].mxu1 }
 0x4ae   :  { %v4242_v44 = vpack.c.bf16 %v3530_v17, %v3528_v16  ;;  %v3532_v47 = vpop.f32.mrb[78].mxu1 }
 0x4af   :  { %v3533_v18 = vpop.f32.mrb[79].mxu1 }
 0x4b0   :  { %3756 = vst [vmem:[%s5567_s10 + $0xe8] sm:$0x33] %v4242_v44 }
 0x4b1   :  { %5066 = dma.done.wait [#allocation4], 768  }
 0x4b2   :  { %5067 = vsyncadd [#allocation4], 4294966528 }
 0x4b3   :  { %5068 = dma.done.wait [#allocation15], 256  }
 0x4b4   :  { %5069 = vsyncadd [#allocation15], 4294967040 }
 0x4b5   :  { %3791 = vsyncpa [#allocation3], 1 }
 0x4b6   :  { %3792 = vsyncpa [#allocation6], 1 }
 0x4b7   :  { %3793 = vsyncpa [#allocation9], 1 }
 0x4b8   :  { %3794 = vsyncpa [#allocation12], 1 }
 0x4b9   :  { %3795 = vsyncpa [#allocation4], 1 }
 0x4ba   :  { %3796 = vsyncpa [#allocation15], 1 }

</bundles_post_ra>
